<compile_context>
chip_gen: v7x
topology: tpu7x:2x2x1
jax: 0.10.0
libtpu: 0.0.40
codegen_flags: <defaults>
</compile_context>

<pallas_src>
import functools

import jax
import jax.numpy as jnp
from jax import lax
from jax.experimental import pallas as pl
from jax.experimental.pallas import tpu as pltpu


def _round_up(x, m):
    return ((x + m - 1) // m) * m


def _pick_time_tile(T, max_tile=32):
    """Pick the LSTM time chunk size.

    Padded (wasted) serial steps and per-grid-step overhead both cost roughly
    the same (~0.35us), so minimize padded_steps + num_chunks.
    """
    best, best_cost = 8, None
    for tt in (8, 16, 32):
        if tt > max_tile:
            continue
        Tp = _round_up(max(T, 1), tt)
        cost = (Tp - T) + Tp // tt
        if best_cost is None or cost < best_cost:
            best, best_cost = tt, cost
    return best


def _num_tensorcores():
    """Heuristic: v7x chips have 2 TensorCores, v5e/v6e have 1."""
    try:
        kind = jax.devices()[0].device_kind.lower()
        return 2 if ("v7" in kind or "7x" in kind) else 1
    except Exception:  # pragma: no cover - defensive
        return 1


# --------------------------- recurrent LSTM kernel ---------------------------

def _lstm_kernel(x_ref, wih_ref, whh_ref, b_ref, h_out_ref,
                 h_sc, c_sc, gx_sc, *, hidden_size, tt, bb):
    """One grid step == one chunk of `tt` LSTM time steps for one batch block.

    x_ref:     (tt, bb, E)  bf16  input chunk
    wih_ref:   (E, 4H)      bf16
    whh_ref:   (H, 4H)      bf16
    b_ref:     (1, 4H)      f32   (b_ih + b_hh)
    h_out_ref: (tt, bb, H)  bf16  hidden state for every step of the chunk
    h_sc/c_sc: (bb, H)      f32   recurrent state, persists across time chunks
    gx_sc:     (tt, bb, 4H) f32   chunk-level input projection
    """
    H = hidden_size
    t_chunk = pl.program_id(1)  # time axis is the trailing (sequential) axis

    @pl.when(t_chunk == 0)
    def _():
        h_sc[...] = jnp.zeros_like(h_sc)
        c_sc[...] = jnp.zeros_like(c_sc)

    # Input projection + bias for the whole chunk: one (tt*bb, E) @ (E, 4H)
    # bf16 MXU matmul with f32 accumulation, hoisted off the serial chain.
    x_flat = x_ref[...].reshape(tt * bb, -1)
    gx = jnp.dot(x_flat, wih_ref[...],
                 preferred_element_type=jnp.float32) + b_ref[...]
    gx_sc[...] = gx.reshape(tt, bb, 4 * H)

    whh = whh_ref[...]  # hoisted; constant across the step loop
    # TODO(synk): pin W_hh in the MXU weight staging registers across the
    # unrolled loop (pltpu.matmul_push_rhs / matmul_acc_lhs / matmul_pop) to
    # drop the per-step RHS re-stream from the serial critical path.

    def sigm(v):
        # Single-EUP-op sigmoid: sigmoid(x) = 0.5 * (1 + tanh(x / 2)).
        return 0.5 * jnp.tanh(0.5 * v) + 0.5

    def step(i, carry):
        h, c = carry  # f32 (bb, H)
        gates = gx_sc[i] + jnp.dot(h.astype(jnp.bfloat16), whh,
                                   preferred_element_type=jnp.float32)
        # Lane-aligned slices when H is a multiple of 128 (correct otherwise).
        i_g = sigm(gates[:, 0 * H:1 * H])
        f_g = sigm(gates[:, 1 * H:2 * H])
        g_g = jnp.tanh(gates[:, 2 * H:3 * H])
        o_g = sigm(gates[:, 3 * H:4 * H])
        c_new = f_g * c + i_g * g_g
        h_new = o_g * jnp.tanh(c_new)
        h_out_ref[i] = h_new.astype(h_out_ref.dtype)
        return h_new, c_new

    h_f, c_f = lax.fori_loop(0, tt, step, (h_sc[...], c_sc[...]), unroll=True)
    h_sc[...] = h_f
    c_sc[...] = c_f


def lstm_pallas(x_tbe, w_ih, w_hh, b, *, time_tile, batch_blocks=1):
    """x_tbe: (Tp, Bp, E) bf16 time-major -> hidden states (Tp, Bp, H) bf16."""
    Tp, Bp, E = x_tbe.shape
    H4 = w_ih.shape[1]
    H = H4 // 4
    tt = time_tile
    assert Tp % tt == 0
    assert Bp % batch_blocks == 0
    bb = Bp // batch_blocks
    assert bb % 16 == 0  # full bf16 sublane groups

    kernel = functools.partial(_lstm_kernel, hidden_size=H, tt=tt, bb=bb)

    grid_spec = pltpu.PrefetchScalarGridSpec(
        num_scalar_prefetch=0,
        # Leading batch-block axis ("parallel", uses both TCs on v7x when >1);
        # trailing time axis is the sequential recurrence.
        grid=(batch_blocks, Tp // tt),
        in_specs=[
            pl.BlockSpec((tt, bb, E), lambda bi, ti: (ti, bi, 0)),  # x chunk
            pl.BlockSpec((E, H4), lambda bi, ti: (0, 0)),           # W_ih
            pl.BlockSpec((H, H4), lambda bi, ti: (0, 0)),           # W_hh
            pl.BlockSpec((1, H4), lambda bi, ti: (0, 0)),           # bias
        ],
        out_specs=pl.BlockSpec((tt, bb, H), lambda bi, ti: (ti, bi, 0)),
        scratch_shapes=[
            pltpu.VMEM((bb, H), jnp.float32),       # h state
            pltpu.VMEM((bb, H), jnp.float32),       # c state
            pltpu.VMEM((tt, bb, H4), jnp.float32),  # chunk input projection
        ],
    )

    return pl.pallas_call(
        kernel,
        out_shape=jax.ShapeDtypeStruct((Tp, Bp, H), jnp.bfloat16),
        grid_spec=grid_spec,
        compiler_params=pltpu.CompilerParams(
            dimension_semantics=("parallel", "arbitrary"),
            # 48 MiB is safe on every generation (v7x has 64 MiB per TC).
            vmem_limit_bytes=48 * 1024 * 1024),
    )(x_tbe, w_ih, w_hh, b)


# ----------------------- fused fc (matmul + bias) kernel ----------------------

def _matmul_bias_kernel(x_ref, w_ref, b_ref, o_ref):
    o_ref[...] = (jnp.dot(x_ref[...], w_ref[...],
                          preferred_element_type=jnp.float32)
                  + b_ref[...]).astype(o_ref.dtype)


def fc_pallas(x, w, b, *, tm, tn):
    """x: (M, H) bf16, w: (H, V) bf16, b: (1, V) f32 -> (M, V) f32 logits."""
    M, K = x.shape
    V = w.shape[1]
    assert M % tm == 0 and V % tn == 0

    grid_spec = pltpu.PrefetchScalarGridSpec(
        num_scalar_prefetch=0,
        grid=(M // tm, V // tn),
        in_specs=[
            pl.BlockSpec((tm, K), lambda i, j: (i, 0)),
            pl.BlockSpec((K, tn), lambda i, j: (0, j)),
            pl.BlockSpec((1, tn), lambda i, j: (0, j)),
        ],
        out_specs=pl.BlockSpec((tm, tn), lambda i, j: (i, j)),
    )

    return pl.pallas_call(
        _matmul_bias_kernel,
        out_shape=jax.ShapeDtypeStruct((M, V), jnp.float32),
        grid_spec=grid_spec,
        compiler_params=pltpu.CompilerParams(
            # Fully parallel grid -> both TensorCores on v7x.
            dimension_semantics=("parallel", "parallel"),
            # Safe on v7x (64 MiB/TC); v5e/v6e (128 MiB) have further headroom.
            vmem_limit_bytes=48 * 1024 * 1024),
    )(x, w, b)


# --------------------------------- wrapper -----------------------------------

def init_params(key, embed_size, hidden_size, vocab_size):
    ks = jax.random.split(key, 6)
    scale = 0.1
    return {
        "embed": scale * jax.random.normal(ks[0], (vocab_size, embed_size), jnp.float32),
        "w_ih": scale * jax.random.normal(ks[1], (embed_size, 4 * hidden_size), jnp.float32),
        "w_hh": scale * jax.random.normal(ks[2], (hidden_size, 4 * hidden_size), jnp.float32),
        # combined b_ih + b_hh of the PyTorch LSTM
        "b": scale * jax.random.normal(ks[3], (1, 4 * hidden_size), jnp.float32),
        "w_fc": scale * jax.random.normal(ks[4], (hidden_size, vocab_size), jnp.float32),
        "b_fc": scale * jax.random.normal(ks[5], (1, vocab_size), jnp.float32),
    }


def decoder_rnn_forward(params, features, captions):
    """
    features: (B, E) float32, captions: (B, T) int32 -> logits (B, T, V) float32.
    Matches DecoderRNN.forward: embed(captions[:, :-1]), prepend features as
    step 0, zero-initialized single-layer LSTM, then fc.
    """
    B, E = features.shape
    T = captions.shape[1]
    H = params["w_hh"].shape[0]
    V = params["w_fc"].shape[1]

    tt = _pick_time_tile(T)
    Tp = _round_up(max(T, 1), tt)       # whole number of time chunks
    Bp = _round_up(max(B, 1), 16)       # full bf16 sublane group -> packed vst

    n_tc = _num_tensorcores()
    batch_blocks = 2 if (n_tc >= 2 and Bp >= 32 and Bp % 32 == 0) else 1

    # --- glue (plain JAX): embedding gather, padding, time-major bf16 layout --
    cap = jnp.pad(captions[:, :-1], ((0, Bp - B), (0, 0)))          # (Bp, T-1)
    cap_t = jnp.transpose(cap, (1, 0))                              # cheap int transpose
    emb_t = jnp.take(params["embed"], cap_t, axis=0)                # (T-1, Bp, E)
    feats = jnp.pad(features, ((0, Bp - B), (0, 0)))                # (Bp, E)
    x_tbe = jnp.concatenate([feats[None].astype(jnp.float32),
                             emb_t.astype(jnp.float32)], axis=0)    # (T, Bp, E)
    x_tbe = jnp.pad(x_tbe, ((0, Tp - T), (0, 0), (0, 0)))           # (Tp, Bp, E)
    x_tbe = x_tbe.astype(jnp.bfloat16)  # half the x HBM->VMEM traffic

    # bf16 weights for MXU throughput / half the weight VMEM+HBM traffic;
    # accumulation stays f32 inside the kernels.
    w_ih = params["w_ih"].astype(jnp.bfloat16)
    w_hh = params["w_hh"].astype(jnp.bfloat16)
    w_fc = params["w_fc"].astype(jnp.bfloat16)

    h_all = lstm_pallas(x_tbe, w_ih, w_hh, params["b"],
                        time_tile=tt, batch_blocks=batch_blocks)    # (Tp, Bp, H) bf16

    # Drop padded batch/time rows before fc (no wasted fc FLOPs / W_fc traffic)
    # and re-lay out h batch-major now, so the fc output is already (B, T, V)
    # row-major and the old logits-sized transpose disappears.  Only h (which
    # is V/H times smaller than the logits) pays this transpose.
    h_bt = jnp.transpose(h_all, (1, 0, 2))[:B, :T]                  # (B, T, H) bf16
    M = B * T
    tm = min(512, _round_up(M, 8))
    Mp = _round_up(M, tm)
    tn = min(1024, _round_up(V, 128))
    Vp = _round_up(V, tn)

    h_flat = jnp.pad(h_bt.reshape(M, H), ((0, Mp - M), (0, 0)))     # (Mp, H)
    w_fc_p = jnp.pad(w_fc, ((0, 0), (0, Vp - V)))                   # (H, Vp)
    b_fc_p = jnp.pad(params["b_fc"], ((0, 0), (0, Vp - V)))         # (1, Vp)

    logits_flat = fc_pallas(h_flat, w_fc_p, b_fc_p, tm=tm, tn=tn)   # (Mp, Vp) f32
    logits = logits_flat[:M, :V].reshape(B, T, V)
    return logits


def decoder_rnn_reference(params, features, captions):
    """Pure-JAX f32 reference of the same forward pass (for validation)."""
    H = params["w_hh"].shape[0]
    emb = jnp.take(params["embed"], captions[:, :-1], axis=0)
    inputs = jnp.concatenate([features[:, None, :], emb], axis=1)   # (B, T, E)
    B = inputs.shape[0]

    def step(carry, x_t):
        h, c = carry
        gates = x_t @ params["w_ih"] + h @ params["w_hh"] + params["b"]
        i_g = jax.nn.sigmoid(gates[:, 0 * H:1 * H])
        f_g = jax.nn.sigmoid(gates[:, 1 * H:2 * H])
        g_g = jnp.tanh(gates[:, 2 * H:3 * H])
        o_g = jax.nn.sigmoid(gates[:, 3 * H:4 * H])
        c = f_g * c + i_g * g_g
        h = o_g * jnp.tanh(c)
        return (h, c), h

    h0 = jnp.zeros((B, H), jnp.float32)
    _, hs = lax.scan(step, (h0, h0), jnp.transpose(inputs, (1, 0, 2)))
    hs = jnp.transpose(hs, (1, 0, 2))                               # (B, T, H)
    return hs @ params["w_fc"] + params["b_fc"]


if __name__ == "__main__":
    # Small but MXU/lane-friendly sizes (H, V multiples of 128).
    batch = 2
    time_steps = 8
    embed_size = 128
    hidden_size = 128
    vocab_size = 256

    key = jax.random.PRNGKey(0)
    k_param, k_feat, k_cap = jax.random.split(key, 3)

    params = init_params(k_param, embed_size, hidden_size, vocab_size)
    features = jax.random.normal(k_feat, (batch, embed_size), jnp.float32)
    captions = jax.random.randint(k_cap, (batch, time_steps), 0, vocab_size, jnp.int32)

    logits = jax.jit(decoder_rnn_forward)(params, features, captions)
    jax.block_until_ready(logits)

    assert logits.shape == (batch, time_steps, vocab_size), logits.shape
    assert logits.dtype == jnp.float32

    ref = decoder_rnn_reference(params, features, captions)
    max_err = float(jnp.max(jnp.abs(logits - ref)))
    assert max_err < 0.25, f"mismatch vs f32 reference, max abs err = {max_err}"

    print("KERNEL_OK")
</pallas_src>

<mosaic_0001>
module attributes {stable_mosaic.version = 11 : i64} {
  func.func @_lstm_kernel(%arg0: i32, %arg1: i32, %arg2: memref<8x16x128xbf16, #tpu.memory_space<vmem>>, %arg3: memref<128x512xbf16, #tpu.memory_space<vmem>>, %arg4: memref<128x512xbf16, #tpu.memory_space<vmem>>, %arg5: memref<1x512xf32, #tpu.memory_space<vmem>>, %arg6: memref<8x16x128xbf16, #tpu.memory_space<vmem>>, %arg7: memref<16x128xf32, #tpu.memory_space<vmem>>, %arg8: memref<16x128xf32, #tpu.memory_space<vmem>>, %arg9: memref<8x16x512xf32, #tpu.memory_space<vmem>>) attributes {dimension_semantics = [#tpu.dimension_semantics<parallel>, #tpu.dimension_semantics<arbitrary>], iteration_bounds = array<i64: 1, 1>, scalar_prefetch = 0 : i64, scratch_operands = 3 : i64, tpu.core_type = #tpu.core_type<tc>, window_params = [{transform_indices = @transform_0, window_bounds = array<i64: 8, 16, 128>}, {pipeline_mode = #tpu.pipeline_mode<synchronous>, transform_indices = @transform_1, window_bounds = array<i64: 128, 512>}, {pipeline_mode = #tpu.pipeline_mode<synchronous>, transform_indices = @transform_2, window_bounds = array<i64: 128, 512>}, {pipeline_mode = #tpu.pipeline_mode<synchronous>, transform_indices = @transform_3, window_bounds = array<i64: 1, 512>}, {transform_indices = @transform_4, window_bounds = array<i64: 8, 16, 128>}]} {
    %c0_i32 = arith.constant 0 : i32
    %0 = arith.cmpi eq, %arg1, %c0_i32 : i32
    %1 = arith.extui %0 : i1 to i32
    %c0_i32_0 = arith.constant 0 : i32
    %2 = arith.cmpi ne, %1, %c0_i32_0 : i32
    scf.if %2 {
      %cst_133 = arith.constant 0.000000e+00 : f32
      %353 = vector.broadcast %cst_133 : f32 to vector<16x128xf32>
      %c0_134 = arith.constant 0 : index
      %c0_135 = arith.constant 0 : index
      %354 = vector.load %arg7[%c0_134, %c0_135] : memref<16x128xf32, #tpu.memory_space<vmem>>, vector<16x128xf32>
      tpu.vector_store %arg7[%c0_134, %c0_135], %353 {strides = array<i32>} : memref<16x128xf32, #tpu.memory_space<vmem>>, vector<16x128xf32>,
      %cst_136 = arith.constant 0.000000e+00 : f32
      %355 = vector.broadcast %cst_136 : f32 to vector<16x128xf32>
      %c0_137 = arith.constant 0 : index
      %c0_138 = arith.constant 0 : index
      %356 = vector.load %arg8[%c0_137, %c0_138] : memref<16x128xf32, #tpu.memory_space<vmem>>, vector<16x128xf32>
      tpu.vector_store %arg8[%c0_137, %c0_138], %355 {strides = array<i32>} : memref<16x128xf32, #tpu.memory_space<vmem>>, vector<16x128xf32>,
    } else {
    }
    %c0 = arith.constant 0 : index
    %c0_1 = arith.constant 0 : index
    %c0_2 = arith.constant 0 : index
    %3 = vector.load %arg2[%c0, %c0_1, %c0_2] : memref<8x16x128xbf16, #tpu.memory_space<vmem>>, vector<8x16x128xbf16>
    %4 = vector.shape_cast %3 : vector<8x16x128xbf16> to vector<128x128xbf16>
    %c0_3 = arith.constant 0 : index
    %c0_4 = arith.constant 0 : index
    %5 = vector.load %arg3[%c0_3, %c0_4] : memref<128x512xbf16, #tpu.memory_space<vmem>>, vector<128x512xbf16>
    %cst = arith.constant dense<0.000000e+00> : vector<128x512xf32>
    %6 = tpu.matmul %4, %5, %cst {dimension_numbers = #tpu.dot_dimension_numbers<[1], [0], [0], [1], [0, 0, 1, 1], [], []>} : vector<128x128xbf16>, vector<128x512xbf16>, vector<128x512xf32> -> vector<128x512xf32>
    %c0_5 = arith.constant 0 : index
    %c0_6 = arith.constant 0 : index
    %7 = vector.load %arg5[%c0_5, %c0_6] : memref<1x512xf32, #tpu.memory_space<vmem>>, vector<1x512xf32>
    %8 = vector.broadcast %7 : vector<1x512xf32> to vector<128x512xf32>
    %9 = arith.addf %6, %8 : vector<128x512xf32>
    %10 = vector.shape_cast %9 : vector<128x512xf32> to vector<8x16x512xf32>
    %c0_7 = arith.constant 0 : index
    %c0_8 = arith.constant 0 : index
    %c0_9 = arith.constant 0 : index
    %11 = vector.load %arg9[%c0_7, %c0_8, %c0_9] : memref<8x16x512xf32, #tpu.memory_space<vmem>>, vector<8x16x512xf32>
    tpu.vector_store %arg9[%c0_7, %c0_8, %c0_9], %10 {strides = array<i32>} : memref<8x16x512xf32, #tpu.memory_space<vmem>>, vector<8x16x512xf32>,
    %c0_10 = arith.constant 0 : index
    %c0_11 = arith.constant 0 : index
    %12 = vector.load %arg4[%c0_10, %c0_11] : memref<128x512xbf16, #tpu.memory_space<vmem>>, vector<128x512xbf16>
    %c0_12 = arith.constant 0 : index
    %c0_13 = arith.constant 0 : index
    %13 = vector.load %arg7[%c0_12, %c0_13] : memref<16x128xf32, #tpu.memory_space<vmem>>, vector<16x128xf32>
    %c0_14 = arith.constant 0 : index
    %c0_15 = arith.constant 0 : index
    %14 = vector.load %arg8[%c0_14, %c0_15] : memref<16x128xf32, #tpu.memory_space<vmem>>, vector<16x128xf32>
    %c0_i32_16 = arith.constant 0 : i32
    %15 = arith.index_cast %c0_i32_16 : i32 to index
    %c0_17 = arith.constant 0 : index
    %c0_18 = arith.constant 0 : index
    %16 = vector.load %arg9[%15, %c0_17, %c0_18] : memref<8x16x512xf32, #tpu.memory_space<vmem>>, vector<1x16x512xf32>
    %17 = vector.shape_cast %16 : vector<1x16x512xf32> to vector<16x512xf32>
    %18 = arith.truncf %13 : vector<16x128xf32> to vector<16x128xbf16>
    %cst_19 = arith.constant dense<0.000000e+00> : vector<16x512xf32>
    %19 = tpu.matmul %18, %12, %cst_19 {dimension_numbers = #tpu.dot_dimension_numbers<[1], [0], [0], [1], [0, 0, 1, 1], [], []>} : vector<16x128xbf16>, vector<128x512xbf16>, vector<16x512xf32> -> vector<16x512xf32>
    %20 = arith.addf %17, %19 : vector<16x512xf32>
    %21 = vector.extract_strided_slice %20 {offsets = [0, 0], sizes = [16, 128], strides = [1, 1]} : vector<16x512xf32> to vector<16x128xf32>
    %cst_20 = arith.constant 5.000000e-01 : f32
    %22 = vector.broadcast %cst_20 : f32 to vector<16x128xf32>
    %23 = arith.mulf %22, %21 : vector<16x128xf32>
    %24 = math.tanh %23 : vector<16x128xf32>
    %cst_21 = arith.constant 5.000000e-01 : f32
    %25 = vector.broadcast %cst_21 : f32 to vector<16x128xf32>
    %26 = arith.mulf %25, %24 : vector<16x128xf32>
    %cst_22 = arith.constant 5.000000e-01 : f32
    %27 = vector.broadcast %cst_22 : f32 to vector<16x128xf32>
    %28 = arith.addf %26, %27 : vector<16x128xf32>
    %29 = vector.extract_strided_slice %20 {offsets = [0, 128], sizes = [16, 128], strides = [1, 1]} : vector<16x512xf32> to vector<16x128xf32>
    %cst_23 = arith.constant 5.000000e-01 : f32
    %30 = vector.broadcast %cst_23 : f32 to vector<16x128xf32>
    %31 = arith.mulf %30, %29 : vector<16x128xf32>
    %32 = math.tanh %31 : vector<16x128xf32>
    %cst_24 = arith.constant 5.000000e-01 : f32
    %33 = vector.broadcast %cst_24 : f32 to vector<16x128xf32>
    %34 = arith.mulf %33, %32 : vector<16x128xf32>
    %cst_25 = arith.constant 5.000000e-01 : f32
    %35 = vector.broadcast %cst_25 : f32 to vector<16x128xf32>
    %36 = arith.addf %34, %35 : vector<16x128xf32>
    %37 = vector.extract_strided_slice %20 {offsets = [0, 256], sizes = [16, 128], strides = [1, 1]} : vector<16x512xf32> to vector<16x128xf32>
    %38 = math.tanh %37 : vector<16x128xf32>
    %39 = vector.extract_strided_slice %20 {offsets = [0, 384], sizes = [16, 128], strides = [1, 1]} : vector<16x512xf32> to vector<16x128xf32>
    %cst_26 = arith.constant 5.000000e-01 : f32
    %40 = vector.broadcast %cst_26 : f32 to vector<16x128xf32>
    %41 = arith.mulf %40, %39 : vector<16x128xf32>
    %42 = math.tanh %41 : vector<16x128xf32>
    %cst_27 = arith.constant 5.000000e-01 : f32
    %43 = vector.broadcast %cst_27 : f32 to vector<16x128xf32>
    %44 = arith.mulf %43, %42 : vector<16x128xf32>
    %cst_28 = arith.constant 5.000000e-01 : f32
    %45 = vector.broadcast %cst_28 : f32 to vector<16x128xf32>
    %46 = arith.addf %44, %45 : vector<16x128xf32>
    %47 = arith.mulf %36, %14 : vector<16x128xf32>
    %48 = arith.mulf %28, %38 : vector<16x128xf32>
    %49 = arith.addf %47, %48 : vector<16x128xf32>
    %50 = math.tanh %49 : vector<16x128xf32>
    %51 = arith.mulf %46, %50 : vector<16x128xf32>
    %52 = arith.truncf %51 : vector<16x128xf32> to vector<16x128xbf16>
    %53 = arith.index_cast %c0_i32_16 : i32 to index
    %c0_29 = arith.constant 0 : index
    %c0_30 = arith.constant 0 : index
    %54 = vector.load %arg6[%53, %c0_29, %c0_30] : memref<8x16x128xbf16, #tpu.memory_space<vmem>>, vector<1x16x128xbf16>
    %55 = vector.shape_cast %54 : vector<1x16x128xbf16> to vector<16x128xbf16>
    %56 = vector.shape_cast %52 : vector<16x128xbf16> to vector<1x16x128xbf16>
    tpu.vector_store %arg6[%53, %c0_29, %c0_30], %56 {strides = array<i32>} : memref<8x16x128xbf16, #tpu.memory_space<vmem>>, vector<1x16x128xbf16>,
    %c1_i32 = arith.constant 1 : i32
    %57 = arith.index_cast %c1_i32 : i32 to index
    %c0_31 = arith.constant 0 : index
    %c0_32 = arith.constant 0 : index
    %58 = vector.load %arg9[%57, %c0_31, %c0_32] : memref<8x16x512xf32, #tpu.memory_space<vmem>>, vector<1x16x512xf32>
    %59 = vector.shape_cast %58 : vector<1x16x512xf32> to vector<16x512xf32>
    %60 = arith.truncf %51 : vector<16x128xf32> to vector<16x128xbf16>
    %cst_33 = arith.constant dense<0.000000e+00> : vector<16x512xf32>
    %61 = tpu.matmul %60, %12, %cst_33 {dimension_numbers = #tpu.dot_dimension_numbers<[1], [0], [0], [1], [0, 0, 1, 1], [], []>} : vector<16x128xbf16>, vector<128x512xbf16>, vector<16x512xf32> -> vector<16x512xf32>
    %62 = arith.addf %59, %61 : vector<16x512xf32>
    %63 = vector.extract_strided_slice %62 {offsets = [0, 0], sizes = [16, 128], strides = [1, 1]} : vector<16x512xf32> to vector<16x128xf32>
    %cst_34 = arith.constant 5.000000e-01 : f32
    %64 = vector.broadcast %cst_34 : f32 to vector<16x128xf32>
    %65 = arith.mulf %64, %63 : vector<16x128xf32>
    %66 = math.tanh %65 : vector<16x128xf32>
    %cst_35 = arith.constant 5.000000e-01 : f32
    %67 = vector.broadcast %cst_35 : f32 to vector<16x128xf32>
    %68 = arith.mulf %67, %66 : vector<16x128xf32>
    %cst_36 = arith.constant 5.000000e-01 : f32
    %69 = vector.broadcast %cst_36 : f32 to vector<16x128xf32>
    %70 = arith.addf %68, %69 : vector<16x128xf32>
    %71 = vector.extract_strided_slice %62 {offsets = [0, 128], sizes = [16, 128], strides = [1, 1]} : vector<16x512xf32> to vector<16x128xf32>
    %cst_37 = arith.constant 5.000000e-01 : f32
    %72 = vector.broadcast %cst_37 : f32 to vector<16x128xf32>
    %73 = arith.mulf %72, %71 : vector<16x128xf32>
    %74 = math.tanh %73 : vector<16x128xf32>
    %cst_38 = arith.constant 5.000000e-01 : f32
    %75 = vector.broadcast %cst_38 : f32 to vector<16x128xf32>
    %76 = arith.mulf %75, %74 : vector<16x128xf32>
    %cst_39 = arith.constant 5.000000e-01 : f32
    %77 = vector.broadcast %cst_39 : f32 to vector<16x128xf32>
    %78 = arith.addf %76, %77 : vector<16x128xf32>
    %79 = vector.extract_strided_slice %62 {offsets = [0, 256], sizes = [16, 128], strides = [1, 1]} : vector<16x512xf32> to vector<16x128xf32>
    %80 = math.tanh %79 : vector<16x128xf32>
    %81 = vector.extract_strided_slice %62 {offsets = [0, 384], sizes = [16, 128], strides = [1, 1]} : vector<16x512xf32> to vector<16x128xf32>
    %cst_40 = arith.constant 5.000000e-01 : f32
    %82 = vector.broadcast %cst_40 : f32 to vector<16x128xf32>
    %83 = arith.mulf %82, %81 : vector<16x128xf32>
    %84 = math.tanh %83 : vector<16x128xf32>
    %cst_41 = arith.constant 5.000000e-01 : f32
    %85 = vector.broadcast %cst_41 : f32 to vector<16x128xf32>
    %86 = arith.mulf %85, %84 : vector<16x128xf32>
    %cst_42 = arith.constant 5.000000e-01 : f32
    %87 = vector.broadcast %cst_42 : f32 to vector<16x128xf32>
    %88 = arith.addf %86, %87 : vector<16x128xf32>
    %89 = arith.mulf %78, %49 : vector<16x128xf32>
    %90 = arith.mulf %70, %80 : vector<16x128xf32>
    %91 = arith.addf %89, %90 : vector<16x128xf32>
    %92 = math.tanh %91 : vector<16x128xf32>
    %93 = arith.mulf %88, %92 : vector<16x128xf32>
    %94 = arith.truncf %93 : vector<16x128xf32> to vector<16x128xbf16>
    %95 = arith.index_cast %c1_i32 : i32 to index
    %c0_43 = arith.constant 0 : index
    %c0_44 = arith.constant 0 : index
    %96 = vector.load %arg6[%95, %c0_43, %c0_44] : memref<8x16x128xbf16, #tpu.memory_space<vmem>>, vector<1x16x128xbf16>
    %97 = vector.shape_cast %96 : vector<1x16x128xbf16> to vector<16x128xbf16>
    %98 = vector.shape_cast %94 : vector<16x128xbf16> to vector<1x16x128xbf16>
    tpu.vector_store %arg6[%95, %c0_43, %c0_44], %98 {strides = array<i32>} : memref<8x16x128xbf16, #tpu.memory_space<vmem>>, vector<1x16x128xbf16>,
    %c2_i32 = arith.constant 2 : i32
    %99 = arith.index_cast %c2_i32 : i32 to index
    %c0_45 = arith.constant 0 : index
    %c0_46 = arith.constant 0 : index
    %100 = vector.load %arg9[%99, %c0_45, %c0_46] : memref<8x16x512xf32, #tpu.memory_space<vmem>>, vector<1x16x512xf32>
    %101 = vector.shape_cast %100 : vector<1x16x512xf32> to vector<16x512xf32>
    %102 = arith.truncf %93 : vector<16x128xf32> to vector<16x128xbf16>
    %cst_47 = arith.constant dense<0.000000e+00> : vector<16x512xf32>
    %103 = tpu.matmul %102, %12, %cst_47 {dimension_numbers = #tpu.dot_dimension_numbers<[1], [0], [0], [1], [0, 0, 1, 1], [], []>} : vector<16x128xbf16>, vector<128x512xbf16>, vector<16x512xf32> -> vector<16x512xf32>
    %104 = arith.addf %101, %103 : vector<16x512xf32>
    %105 = vector.extract_strided_slice %104 {offsets = [0, 0], sizes = [16, 128], strides = [1, 1]} : vector<16x512xf32> to vector<16x128xf32>
    %cst_48 = arith.constant 5.000000e-01 : f32
    %106 = vector.broadcast %cst_48 : f32 to vector<16x128xf32>
    %107 = arith.mulf %106, %105 : vector<16x128xf32>
    %108 = math.tanh %107 : vector<16x128xf32>
    %cst_49 = arith.constant 5.000000e-01 : f32
    %109 = vector.broadcast %cst_49 : f32 to vector<16x128xf32>
    %110 = arith.mulf %109, %108 : vector<16x128xf32>
    %cst_50 = arith.constant 5.000000e-01 : f32
    %111 = vector.broadcast %cst_50 : f32 to vector<16x128xf32>
    %112 = arith.addf %110, %111 : vector<16x128xf32>
    %113 = vector.extract_strided_slice %104 {offsets = [0, 128], sizes = [16, 128], strides = [1, 1]} : vector<16x512xf32> to vector<16x128xf32>
    %cst_51 = arith.constant 5.000000e-01 : f32
    %114 = vector.broadcast %cst_51 : f32 to vector<16x128xf32>
    %115 = arith.mulf %114, %113 : vector<16x128xf32>
    %116 = math.tanh %115 : vector<16x128xf32>
    %cst_52 = arith.constant 5.000000e-01 : f32
    %117 = vector.broadcast %cst_52 : f32 to vector<16x128xf32>
    %118 = arith.mulf %117, %116 : vector<16x128xf32>
    %cst_53 = arith.constant 5.000000e-01 : f32
    %119 = vector.broadcast %cst_53 : f32 to vector<16x128xf32>
    %120 = arith.addf %118, %119 : vector<16x128xf32>
    %121 = vector.extract_strided_slice %104 {offsets = [0, 256], sizes = [16, 128], strides = [1, 1]} : vector<16x512xf32> to vector<16x128xf32>
    %122 = math.tanh %121 : vector<16x128xf32>
    %123 = vector.extract_strided_slice %104 {offsets = [0, 384], sizes = [16, 128], strides = [1, 1]} : vector<16x512xf32> to vector<16x128xf32>
    %cst_54 = arith.constant 5.000000e-01 : f32
    %124 = vector.broadcast %cst_54 : f32 to vector<16x128xf32>
    %125 = arith.mulf %124, %123 : vector<16x128xf32>
    %126 = math.tanh %125 : vector<16x128xf32>
    %cst_55 = arith.constant 5.000000e-01 : f32
    %127 = vector.broadcast %cst_55 : f32 to vector<16x128xf32>
    %128 = arith.mulf %127, %126 : vector<16x128xf32>
    %cst_56 = arith.constant 5.000000e-01 : f32
    %129 = vector.broadcast %cst_56 : f32 to vector<16x128xf32>
    %130 = arith.addf %128, %129 : vector<16x128xf32>
    %131 = arith.mulf %120, %91 : vector<16x128xf32>
    %132 = arith.mulf %112, %122 : vector<16x128xf32>
    %133 = arith.addf %131, %132 : vector<16x128xf32>
    %134 = math.tanh %133 : vector<16x128xf32>
    %135 = arith.mulf %130, %134 : vector<16x128xf32>
    %136 = arith.truncf %135 : vector<16x128xf32> to vector<16x128xbf16>
    %137 = arith.index_cast %c2_i32 : i32 to index
    %c0_57 = arith.constant 0 : index
    %c0_58 = arith.constant 0 : index
    %138 = vector.load %arg6[%137, %c0_57, %c0_58] : memref<8x16x128xbf16, #tpu.memory_space<vmem>>, vector<1x16x128xbf16>
    %139 = vector.shape_cast %138 : vector<1x16x128xbf16> to vector<16x128xbf16>
    %140 = vector.shape_cast %136 : vector<16x128xbf16> to vector<1x16x128xbf16>
    tpu.vector_store %arg6[%137, %c0_57, %c0_58], %140 {strides = array<i32>} : memref<8x16x128xbf16, #tpu.memory_space<vmem>>, vector<1x16x128xbf16>,
    %c3_i32 = arith.constant 3 : i32
    %141 = arith.index_cast %c3_i32 : i32 to index
    %c0_59 = arith.constant 0 : index
    %c0_60 = arith.constant 0 : index
    %142 = vector.load %arg9[%141, %c0_59, %c0_60] : memref<8x16x512xf32, #tpu.memory_space<vmem>>, vector<1x16x512xf32>
    %143 = vector.shape_cast %142 : vector<1x16x512xf32> to vector<16x512xf32>
    %144 = arith.truncf %135 : vector<16x128xf32> to vector<16x128xbf16>
    %cst_61 = arith.constant dense<0.000000e+00> : vector<16x512xf32>
    %145 = tpu.matmul %144, %12, %cst_61 {dimension_numbers = #tpu.dot_dimension_numbers<[1], [0], [0], [1], [0, 0, 1, 1], [], []>} : vector<16x128xbf16>, vector<128x512xbf16>, vector<16x512xf32> -> vector<16x512xf32>
    %146 = arith.addf %143, %145 : vector<16x512xf32>
    %147 = vector.extract_strided_slice %146 {offsets = [0, 0], sizes = [16, 128], strides = [1, 1]} : vector<16x512xf32> to vector<16x128xf32>
    %cst_62 = arith.constant 5.000000e-01 : f32
    %148 = vector.broadcast %cst_62 : f32 to vector<16x128xf32>
    %149 = arith.mulf %148, %147 : vector<16x128xf32>
    %150 = math.tanh %149 : vector<16x128xf32>
    %cst_63 = arith.constant 5.000000e-01 : f32
    %151 = vector.broadcast %cst_63 : f32 to vector<16x128xf32>
    %152 = arith.mulf %151, %150 : vector<16x128xf32>
    %cst_64 = arith.constant 5.000000e-01 : f32
    %153 = vector.broadcast %cst_64 : f32 to vector<16x128xf32>
    %154 = arith.addf %152, %153 : vector<16x128xf32>
    %155 = vector.extract_strided_slice %146 {offsets = [0, 128], sizes = [16, 128], strides = [1, 1]} : vector<16x512xf32> to vector<16x128xf32>
    %cst_65 = arith.constant 5.000000e-01 : f32
    %156 = vector.broadcast %cst_65 : f32 to vector<16x128xf32>
    %157 = arith.mulf %156, %155 : vector<16x128xf32>
    %158 = math.tanh %157 : vector<16x128xf32>
    %cst_66 = arith.constant 5.000000e-01 : f32
    %159 = vector.broadcast %cst_66 : f32 to vector<16x128xf32>
    %160 = arith.mulf %159, %158 : vector<16x128xf32>
    %cst_67 = arith.constant 5.000000e-01 : f32
    %161 = vector.broadcast %cst_67 : f32 to vector<16x128xf32>
    %162 = arith.addf %160, %161 : vector<16x128xf32>
    %163 = vector.extract_strided_slice %146 {offsets = [0, 256], sizes = [16, 128], strides = [1, 1]} : vector<16x512xf32> to vector<16x128xf32>
    %164 = math.tanh %163 : vector<16x128xf32>
    %165 = vector.extract_strided_slice %146 {offsets = [0, 384], sizes = [16, 128], strides = [1, 1]} : vector<16x512xf32> to vector<16x128xf32>
    %cst_68 = arith.constant 5.000000e-01 : f32
    %166 = vector.broadcast %cst_68 : f32 to vector<16x128xf32>
    %167 = arith.mulf %166, %165 : vector<16x128xf32>
    %168 = math.tanh %167 : vector<16x128xf32>
    %cst_69 = arith.constant 5.000000e-01 : f32
    %169 = vector.broadcast %cst_69 : f32 to vector<16x128xf32>
    %170 = arith.mulf %169, %168 : vector<16x128xf32>
    %cst_70 = arith.constant 5.000000e-01 : f32
    %171 = vector.broadcast %cst_70 : f32 to vector<16x128xf32>
    %172 = arith.addf %170, %171 : vector<16x128xf32>
    %173 = arith.mulf %162, %133 : vector<16x128xf32>
    %174 = arith.mulf %154, %164 : vector<16x128xf32>
    %175 = arith.addf %173, %174 : vector<16x128xf32>
    %176 = math.tanh %175 : vector<16x128xf32>
    %177 = arith.mulf %172, %176 : vector<16x128xf32>
    %178 = arith.truncf %177 : vector<16x128xf32> to vector<16x128xbf16>
    %179 = arith.index_cast %c3_i32 : i32 to index
    %c0_71 = arith.constant 0 : index
    %c0_72 = arith.constant 0 : index
    %180 = vector.load %arg6[%179, %c0_71, %c0_72] : memref<8x16x128xbf16, #tpu.memory_space<vmem>>, vector<1x16x128xbf16>
    %181 = vector.shape_cast %180 : vector<1x16x128xbf16> to vector<16x128xbf16>
    %182 = vector.shape_cast %178 : vector<16x128xbf16> to vector<1x16x128xbf16>
    tpu.vector_store %arg6[%179, %c0_71, %c0_72], %182 {strides = array<i32>} : memref<8x16x128xbf16, #tpu.memory_space<vmem>>, vector<1x16x128xbf16>,
    %c4_i32 = arith.constant 4 : i32
    %183 = arith.index_cast %c4_i32 : i32 to index
    %c0_73 = arith.constant 0 : index
    %c0_74 = arith.constant 0 : index
    %184 = vector.load %arg9[%183, %c0_73, %c0_74] : memref<8x16x512xf32, #tpu.memory_space<vmem>>, vector<1x16x512xf32>
    %185 = vector.shape_cast %184 : vector<1x16x512xf32> to vector<16x512xf32>
    %186 = arith.truncf %177 : vector<16x128xf32> to vector<16x128xbf16>
    %cst_75 = arith.constant dense<0.000000e+00> : vector<16x512xf32>
    %187 = tpu.matmul %186, %12, %cst_75 {dimension_numbers = #tpu.dot_dimension_numbers<[1], [0], [0], [1], [0, 0, 1, 1], [], []>} : vector<16x128xbf16>, vector<128x512xbf16>, vector<16x512xf32> -> vector<16x512xf32>
    %188 = arith.addf %185, %187 : vector<16x512xf32>
    %189 = vector.extract_strided_slice %188 {offsets = [0, 0], sizes = [16, 128], strides = [1, 1]} : vector<16x512xf32> to vector<16x128xf32>
    %cst_76 = arith.constant 5.000000e-01 : f32
    %190 = vector.broadcast %cst_76 : f32 to vector<16x128xf32>
    %191 = arith.mulf %190, %189 : vector<16x128xf32>
    %192 = math.tanh %191 : vector<16x128xf32>
    %cst_77 = arith.constant 5.000000e-01 : f32
    %193 = vector.broadcast %cst_77 : f32 to vector<16x128xf32>
    %194 = arith.mulf %193, %192 : vector<16x128xf32>
    %cst_78 = arith.constant 5.000000e-01 : f32
    %195 = vector.broadcast %cst_78 : f32 to vector<16x128xf32>
    %196 = arith.addf %194, %195 : vector<16x128xf32>
    %197 = vector.extract_strided_slice %188 {offsets = [0, 128], sizes = [16, 128], strides = [1, 1]} : vector<16x512xf32> to vector<16x128xf32>
    %cst_79 = arith.constant 5.000000e-01 : f32
    %198 = vector.broadcast %cst_79 : f32 to vector<16x128xf32>
    %199 = arith.mulf %198, %197 : vector<16x128xf32>
    %200 = math.tanh %199 : vector<16x128xf32>
    %cst_80 = arith.constant 5.000000e-01 : f32
    %201 = vector.broadcast %cst_80 : f32 to vector<16x128xf32>
    %202 = arith.mulf %201, %200 : vector<16x128xf32>
    %cst_81 = arith.constant 5.000000e-01 : f32
    %203 = vector.broadcast %cst_81 : f32 to vector<16x128xf32>
    %204 = arith.addf %202, %203 : vector<16x128xf32>
    %205 = vector.extract_strided_slice %188 {offsets = [0, 256], sizes = [16, 128], strides = [1, 1]} : vector<16x512xf32> to vector<16x128xf32>
    %206 = math.tanh %205 : vector<16x128xf32>
    %207 = vector.extract_strided_slice %188 {offsets = [0, 384], sizes = [16, 128], strides = [1, 1]} : vector<16x512xf32> to vector<16x128xf32>
    %cst_82 = arith.constant 5.000000e-01 : f32
    %208 = vector.broadcast %cst_82 : f32 to vector<16x128xf32>
    %209 = arith.mulf %208, %207 : vector<16x128xf32>
    %210 = math.tanh %209 : vector<16x128xf32>
    %cst_83 = arith.constant 5.000000e-01 : f32
    %211 = vector.broadcast %cst_83 : f32 to vector<16x128xf32>
    %212 = arith.mulf %211, %210 : vector<16x128xf32>
    %cst_84 = arith.constant 5.000000e-01 : f32
    %213 = vector.broadcast %cst_84 : f32 to vector<16x128xf32>
    %214 = arith.addf %212, %213 : vector<16x128xf32>
    %215 = arith.mulf %204, %175 : vector<16x128xf32>
    %216 = arith.mulf %196, %206 : vector<16x128xf32>
    %217 = arith.addf %215, %216 : vector<16x128xf32>
    %218 = math.tanh %217 : vector<16x128xf32>
    %219 = arith.mulf %214, %218 : vector<16x128xf32>
    %220 = arith.truncf %219 : vector<16x128xf32> to vector<16x128xbf16>
    %221 = arith.index_cast %c4_i32 : i32 to index
    %c0_85 = arith.constant 0 : index
    %c0_86 = arith.constant 0 : index
    %222 = vector.load %arg6[%221, %c0_85, %c0_86] : memref<8x16x128xbf16, #tpu.memory_space<vmem>>, vector<1x16x128xbf16>
    %223 = vector.shape_cast %222 : vector<1x16x128xbf16> to vector<16x128xbf16>
    %224 = vector.shape_cast %220 : vector<16x128xbf16> to vector<1x16x128xbf16>
    tpu.vector_store %arg6[%221, %c0_85, %c0_86], %224 {strides = array<i32>} : memref<8x16x128xbf16, #tpu.memory_space<vmem>>, vector<1x16x128xbf16>,
    %c5_i32 = arith.constant 5 : i32
    %225 = arith.index_cast %c5_i32 : i32 to index
    %c0_87 = arith.constant 0 : index
    %c0_88 = arith.constant 0 : index
    %226 = vector.load %arg9[%225, %c0_87, %c0_88] : memref<8x16x512xf32, #tpu.memory_space<vmem>>, vector<1x16x512xf32>
    %227 = vector.shape_cast %226 : vector<1x16x512xf32> to vector<16x512xf32>
    %228 = arith.truncf %219 : vector<16x128xf32> to vector<16x128xbf16>
    %cst_89 = arith.constant dense<0.000000e+00> : vector<16x512xf32>
    %229 = tpu.matmul %228, %12, %cst_89 {dimension_numbers = #tpu.dot_dimension_numbers<[1], [0], [0], [1], [0, 0, 1, 1], [], []>} : vector<16x128xbf16>, vector<128x512xbf16>, vector<16x512xf32> -> vector<16x512xf32>
    %230 = arith.addf %227, %229 : vector<16x512xf32>
    %231 = vector.extract_strided_slice %230 {offsets = [0, 0], sizes = [16, 128], strides = [1, 1]} : vector<16x512xf32> to vector<16x128xf32>
    %cst_90 = arith.constant 5.000000e-01 : f32
    %232 = vector.broadcast %cst_90 : f32 to vector<16x128xf32>
    %233 = arith.mulf %232, %231 : vector<16x128xf32>
    %234 = math.tanh %233 : vector<16x128xf32>
    %cst_91 = arith.constant 5.000000e-01 : f32
    %235 = vector.broadcast %cst_91 : f32 to vector<16x128xf32>
    %236 = arith.mulf %235, %234 : vector<16x128xf32>
    %cst_92 = arith.constant 5.000000e-01 : f32
    %237 = vector.broadcast %cst_92 : f32 to vector<16x128xf32>
    %238 = arith.addf %236, %237 : vector<16x128xf32>
    %239 = vector.extract_strided_slice %230 {offsets = [0, 128], sizes = [16, 128], strides = [1, 1]} : vector<16x512xf32> to vector<16x128xf32>
    %cst_93 = arith.constant 5.000000e-01 : f32
    %240 = vector.broadcast %cst_93 : f32 to vector<16x128xf32>
    %241 = arith.mulf %240, %239 : vector<16x128xf32>
    %242 = math.tanh %241 : vector<16x128xf32>
    %cst_94 = arith.constant 5.000000e-01 : f32
    %243 = vector.broadcast %cst_94 : f32 to vector<16x128xf32>
    %244 = arith.mulf %243, %242 : vector<16x128xf32>
    %cst_95 = arith.constant 5.000000e-01 : f32
    %245 = vector.broadcast %cst_95 : f32 to vector<16x128xf32>
    %246 = arith.addf %244, %245 : vector<16x128xf32>
    %247 = vector.extract_strided_slice %230 {offsets = [0, 256], sizes = [16, 128], strides = [1, 1]} : vector<16x512xf32> to vector<16x128xf32>
    %248 = math.tanh %247 : vector<16x128xf32>
    %249 = vector.extract_strided_slice %230 {offsets = [0, 384], sizes = [16, 128], strides = [1, 1]} : vector<16x512xf32> to vector<16x128xf32>
    %cst_96 = arith.constant 5.000000e-01 : f32
    %250 = vector.broadcast %cst_96 : f32 to vector<16x128xf32>
    %251 = arith.mulf %250, %249 : vector<16x128xf32>
    %252 = math.tanh %251 : vector<16x128xf32>
    %cst_97 = arith.constant 5.000000e-01 : f32
    %253 = vector.broadcast %cst_97 : f32 to vector<16x128xf32>
    %254 = arith.mulf %253, %252 : vector<16x128xf32>
    %cst_98 = arith.constant 5.000000e-01 : f32
    %255 = vector.broadcast %cst_98 : f32 to vector<16x128xf32>
    %256 = arith.addf %254, %255 : vector<16x128xf32>
    %257 = arith.mulf %246, %217 : vector<16x128xf32>
    %258 = arith.mulf %238, %248 : vector<16x128xf32>
    %259 = arith.addf %257, %258 : vector<16x128xf32>
    %260 = math.tanh %259 : vector<16x128xf32>
    %261 = arith.mulf %256, %260 : vector<16x128xf32>
    %262 = arith.truncf %261 : vector<16x128xf32> to vector<16x128xbf16>
    %263 = arith.index_cast %c5_i32 : i32 to index
    %c0_99 = arith.constant 0 : index
    %c0_100 = arith.constant 0 : index
    %264 = vector.load %arg6[%263, %c0_99, %c0_100] : memref<8x16x128xbf16, #tpu.memory_space<vmem>>, vector<1x16x128xbf16>
    %265 = vector.shape_cast %264 : vector<1x16x128xbf16> to vector<16x128xbf16>
    %266 = vector.shape_cast %262 : vector<16x128xbf16> to vector<1x16x128xbf16>
    tpu.vector_store %arg6[%263, %c0_99, %c0_100], %266 {strides = array<i32>} : memref<8x16x128xbf16, #tpu.memory_space<vmem>>, vector<1x16x128xbf16>,
    %c6_i32 = arith.constant 6 : i32
    %267 = arith.index_cast %c6_i32 : i32 to index
    %c0_101 = arith.constant 0 : index
    %c0_102 = arith.constant 0 : index
    %268 = vector.load %arg9[%267, %c0_101, %c0_102] : memref<8x16x512xf32, #tpu.memory_space<vmem>>, vector<1x16x512xf32>
    %269 = vector.shape_cast %268 : vector<1x16x512xf32> to vector<16x512xf32>
    %270 = arith.truncf %261 : vector<16x128xf32> to vector<16x128xbf16>
    %cst_103 = arith.constant dense<0.000000e+00> : vector<16x512xf32>
    %271 = tpu.matmul %270, %12, %cst_103 {dimension_numbers = #tpu.dot_dimension_numbers<[1], [0], [0], [1], [0, 0, 1, 1], [], []>} : vector<16x128xbf16>, vector<128x512xbf16>, vector<16x512xf32> -> vector<16x512xf32>
    %272 = arith.addf %269, %271 : vector<16x512xf32>
    %273 = vector.extract_strided_slice %272 {offsets = [0, 0], sizes = [16, 128], strides = [1, 1]} : vector<16x512xf32> to vector<16x128xf32>
    %cst_104 = arith.constant 5.000000e-01 : f32
    %274 = vector.broadcast %cst_104 : f32 to vector<16x128xf32>
    %275 = arith.mulf %274, %273 : vector<16x128xf32>
    %276 = math.tanh %275 : vector<16x128xf32>
    %cst_105 = arith.constant 5.000000e-01 : f32
    %277 = vector.broadcast %cst_105 : f32 to vector<16x128xf32>
    %278 = arith.mulf %277, %276 : vector<16x128xf32>
    %cst_106 = arith.constant 5.000000e-01 : f32
    %279 = vector.broadcast %cst_106 : f32 to vector<16x128xf32>
    %280 = arith.addf %278, %279 : vector<16x128xf32>
    %281 = vector.extract_strided_slice %272 {offsets = [0, 128], sizes = [16, 128], strides = [1, 1]} : vector<16x512xf32> to vector<16x128xf32>
    %cst_107 = arith.constant 5.000000e-01 : f32
    %282 = vector.broadcast %cst_107 : f32 to vector<16x128xf32>
    %283 = arith.mulf %282, %281 : vector<16x128xf32>
    %284 = math.tanh %283 : vector<16x128xf32>
    %cst_108 = arith.constant 5.000000e-01 : f32
    %285 = vector.broadcast %cst_108 : f32 to vector<16x128xf32>
    %286 = arith.mulf %285, %284 : vector<16x128xf32>
    %cst_109 = arith.constant 5.000000e-01 : f32
    %287 = vector.broadcast %cst_109 : f32 to vector<16x128xf32>
    %288 = arith.addf %286, %287 : vector<16x128xf32>
    %289 = vector.extract_strided_slice %272 {offsets = [0, 256], sizes = [16, 128], strides = [1, 1]} : vector<16x512xf32> to vector<16x128xf32>
    %290 = math.tanh %289 : vector<16x128xf32>
    %291 = vector.extract_strided_slice %272 {offsets = [0, 384], sizes = [16, 128], strides = [1, 1]} : vector<16x512xf32> to vector<16x128xf32>
    %cst_110 = arith.constant 5.000000e-01 : f32
    %292 = vector.broadcast %cst_110 : f32 to vector<16x128xf32>
    %293 = arith.mulf %292, %291 : vector<16x128xf32>
    %294 = math.tanh %293 : vector<16x128xf32>
    %cst_111 = arith.constant 5.000000e-01 : f32
    %295 = vector.broadcast %cst_111 : f32 to vector<16x128xf32>
    %296 = arith.mulf %295, %294 : vector<16x128xf32>
    %cst_112 = arith.constant 5.000000e-01 : f32
    %297 = vector.broadcast %cst_112 : f32 to vector<16x128xf32>
    %298 = arith.addf %296, %297 : vector<16x128xf32>
    %299 = arith.mulf %288, %259 : vector<16x128xf32>
    %300 = arith.mulf %280, %290 : vector<16x128xf32>
    %301 = arith.addf %299, %300 : vector<16x128xf32>
    %302 = math.tanh %301 : vector<16x128xf32>
    %303 = arith.mulf %298, %302 : vector<16x128xf32>
    %304 = arith.truncf %303 : vector<16x128xf32> to vector<16x128xbf16>
    %305 = arith.index_cast %c6_i32 : i32 to index
    %c0_113 = arith.constant 0 : index
    %c0_114 = arith.constant 0 : index
    %306 = vector.load %arg6[%305, %c0_113, %c0_114] : memref<8x16x128xbf16, #tpu.memory_space<vmem>>, vector<1x16x128xbf16>
    %307 = vector.shape_cast %306 : vector<1x16x128xbf16> to vector<16x128xbf16>
    %308 = vector.shape_cast %304 : vector<16x128xbf16> to vector<1x16x128xbf16>
    tpu.vector_store %arg6[%305, %c0_113, %c0_114], %308 {strides = array<i32>} : memref<8x16x128xbf16, #tpu.memory_space<vmem>>, vector<1x16x128xbf16>,
    %c7_i32 = arith.constant 7 : i32
    %309 = arith.index_cast %c7_i32 : i32 to index
    %c0_115 = arith.constant 0 : index
    %c0_116 = arith.constant 0 : index
    %310 = vector.load %arg9[%309, %c0_115, %c0_116] : memref<8x16x512xf32, #tpu.memory_space<vmem>>, vector<1x16x512xf32>
    %311 = vector.shape_cast %310 : vector<1x16x512xf32> to vector<16x512xf32>
    %312 = arith.truncf %303 : vector<16x128xf32> to vector<16x128xbf16>
    %cst_117 = arith.constant dense<0.000000e+00> : vector<16x512xf32>
    %313 = tpu.matmul %312, %12, %cst_117 {dimension_numbers = #tpu.dot_dimension_numbers<[1], [0], [0], [1], [0, 0, 1, 1], [], []>} : vector<16x128xbf16>, vector<128x512xbf16>, vector<16x512xf32> -> vector<16x512xf32>
    %314 = arith.addf %311, %313 : vector<16x512xf32>
    %315 = vector.extract_strided_slice %314 {offsets = [0, 0], sizes = [16, 128], strides = [1, 1]} : vector<16x512xf32> to vector<16x128xf32>
    %cst_118 = arith.constant 5.000000e-01 : f32
    %316 = vector.broadcast %cst_118 : f32 to vector<16x128xf32>
    %317 = arith.mulf %316, %315 : vector<16x128xf32>
    %318 = math.tanh %317 : vector<16x128xf32>
    %cst_119 = arith.constant 5.000000e-01 : f32
    %319 = vector.broadcast %cst_119 : f32 to vector<16x128xf32>
    %320 = arith.mulf %319, %318 : vector<16x128xf32>
    %cst_120 = arith.constant 5.000000e-01 : f32
    %321 = vector.broadcast %cst_120 : f32 to vector<16x128xf32>
    %322 = arith.addf %320, %321 : vector<16x128xf32>
    %323 = vector.extract_strided_slice %314 {offsets = [0, 128], sizes = [16, 128], strides = [1, 1]} : vector<16x512xf32> to vector<16x128xf32>
    %cst_121 = arith.constant 5.000000e-01 : f32
    %324 = vector.broadcast %cst_121 : f32 to vector<16x128xf32>
    %325 = arith.mulf %324, %323 : vector<16x128xf32>
    %326 = math.tanh %325 : vector<16x128xf32>
    %cst_122 = arith.constant 5.000000e-01 : f32
    %327 = vector.broadcast %cst_122 : f32 to vector<16x128xf32>
    %328 = arith.mulf %327, %326 : vector<16x128xf32>
    %cst_123 = arith.constant 5.000000e-01 : f32
    %329 = vector.broadcast %cst_123 : f32 to vector<16x128xf32>
    %330 = arith.addf %328, %329 : vector<16x128xf32>
    %331 = vector.extract_strided_slice %314 {offsets = [0, 256], sizes = [16, 128], strides = [1, 1]} : vector<16x512xf32> to vector<16x128xf32>
    %332 = math.tanh %331 : vector<16x128xf32>
    %333 = vector.extract_strided_slice %314 {offsets = [0, 384], sizes = [16, 128], strides = [1, 1]} : vector<16x512xf32> to vector<16x128xf32>
    %cst_124 = arith.constant 5.000000e-01 : f32
    %334 = vector.broadcast %cst_124 : f32 to vector<16x128xf32>
    %335 = arith.mulf %334, %333 : vector<16x128xf32>
    %336 = math.tanh %335 : vector<16x128xf32>
    %cst_125 = arith.constant 5.000000e-01 : f32
    %337 = vector.broadcast %cst_125 : f32 to vector<16x128xf32>
    %338 = arith.mulf %337, %336 : vector<16x128xf32>
    %cst_126 = arith.constant 5.000000e-01 : f32
    %339 = vector.broadcast %cst_126 : f32 to vector<16x128xf32>
    %340 = arith.addf %338, %339 : vector<16x128xf32>
    %341 = arith.mulf %330, %301 : vector<16x128xf32>
    %342 = arith.mulf %322, %332 : vector<16x128xf32>
    %343 = arith.addf %341, %342 : vector<16x128xf32>
    %344 = math.tanh %343 : vector<16x128xf32>
    %345 = arith.mulf %340, %344 : vector<16x128xf32>
    %346 = arith.truncf %345 : vector<16x128xf32> to vector<16x128xbf16>
    %347 = arith.index_cast %c7_i32 : i32 to index
    %c0_127 = arith.constant 0 : index
    %c0_128 = arith.constant 0 : index
    %348 = vector.load %arg6[%347, %c0_127, %c0_128] : memref<8x16x128xbf16, #tpu.memory_space<vmem>>, vector<1x16x128xbf16>
    %349 = vector.shape_cast %348 : vector<1x16x128xbf16> to vector<16x128xbf16>
    %350 = vector.shape_cast %346 : vector<16x128xbf16> to vector<1x16x128xbf16>
    tpu.vector_store %arg6[%347, %c0_127, %c0_128], %350 {strides = array<i32>} : memref<8x16x128xbf16, #tpu.memory_space<vmem>>, vector<1x16x128xbf16>,
    %c8_i32 = arith.constant 8 : i32
    %c0_129 = arith.constant 0 : index
    %c0_130 = arith.constant 0 : index
    %351 = vector.load %arg7[%c0_129, %c0_130] : memref<16x128xf32, #tpu.memory_space<vmem>>, vector<16x128xf32>
    tpu.vector_store %arg7[%c0_129, %c0_130], %345 {strides = array<i32>} : memref<16x128xf32, #tpu.memory_space<vmem>>, vector<16x128xf32>,
    %c0_131 = arith.constant 0 : index
    %c0_132 = arith.constant 0 : index
    %352 = vector.load %arg8[%c0_131, %c0_132] : memref<16x128xf32, #tpu.memory_space<vmem>>, vector<16x128xf32>
    tpu.vector_store %arg8[%c0_131, %c0_132], %343 {strides = array<i32>} : memref<16x128xf32, #tpu.memory_space<vmem>>, vector<16x128xf32>,
    return
  }
  func.func @transform_0(%arg0: i32, %arg1: i32) -> (i32, i32, i32) {
    %c0_i32 = arith.constant 0 : i32
    %c0_i32_0 = arith.constant 0 : i32
    return %arg1, %arg0, %c0_i32 : i32, i32, i32
  }
  func.func @transform_1(%arg0: i32, %arg1: i32) -> (i32, i32) {
    %c0_i32 = arith.constant 0 : i32
    %c0_i32_0 = arith.constant 0 : i32
    %c0_i32_1 = arith.constant 0 : i32
    return %c0_i32, %c0_i32_0 : i32, i32
  }
  func.func @transform_2(%arg0: i32, %arg1: i32) -> (i32, i32) {
    %c0_i32 = arith.constant 0 : i32
    %c0_i32_0 = arith.constant 0 : i32
    %c0_i32_1 = arith.constant 0 : i32
    return %c0_i32, %c0_i32_0 : i32, i32
  }
  func.func @transform_3(%arg0: i32, %arg1: i32) -> (i32, i32) {
    %c0_i32 = arith.constant 0 : i32
    %c0_i32_0 = arith.constant 0 : i32
    %c0_i32_1 = arith.constant 0 : i32
    return %c0_i32, %c0_i32_0 : i32, i32
  }
  func.func @transform_4(%arg0: i32, %arg1: i32) -> (i32, i32, i32) {
    %c0_i32 = arith.constant 0 : i32
    %c0_i32_0 = arith.constant 0 : i32
    return %arg1, %arg0, %c0_i32 : i32, i32, i32
  }
}

module attributes {stable_mosaic.version = 11 : i64} {
  func.func @_matmul_bias_kernel(%arg0: i32, %arg1: i32, %arg2: memref<16x128xbf16, #tpu.memory_space<vmem>>, %arg3: memref<128x256xbf16, #tpu.memory_space<vmem>>, %arg4: memref<1x256xf32, #tpu.memory_space<vmem>>, %arg5: memref<16x256xf32, #tpu.memory_space<vmem>>) attributes {dimension_semantics = [#tpu.dimension_semantics<parallel>, #tpu.dimension_semantics<parallel>], iteration_bounds = array<i64: 1, 1>, scalar_prefetch = 0 : i64, scratch_operands = 0 : i64, tpu.core_type = #tpu.core_type<tc>, window_params = [{transform_indices = @transform_0, window_bounds = array<i64: 16, 128>}, {transform_indices = @transform_1, window_bounds = array<i64: 128, 256>}, {transform_indices = @transform_2, window_bounds = array<i64: 1, 256>}, {transform_indices = @transform_3, window_bounds = array<i64: 16, 256>}]} {
    %c0 = arith.constant 0 : index
    %c0_0 = arith.constant 0 : index
    %0 = vector.load %arg2[%c0, %c0_0] : memref<16x128xbf16, #tpu.memory_space<vmem>>, vector<16x128xbf16>
    %c0_1 = arith.constant 0 : index
    %c0_2 = arith.constant 0 : index
    %1 = vector.load %arg3[%c0_1, %c0_2] : memref<128x256xbf16, #tpu.memory_space<vmem>>, vector<128x256xbf16>
    %cst = arith.constant dense<0.000000e+00> : vector<16x256xf32>
    %2 = tpu.matmul %0, %1, %cst {dimension_numbers = #tpu.dot_dimension_numbers<[1], [0], [0], [1], [0, 0, 1, 1], [], []>} : vector<16x128xbf16>, vector<128x256xbf16>, vector<16x256xf32> -> vector<16x256xf32>
    %c0_3 = arith.constant 0 : index
    %c0_4 = arith.constant 0 : index
    %3 = vector.load %arg4[%c0_3, %c0_4] : memref<1x256xf32, #tpu.memory_space<vmem>>, vector<1x256xf32>
    %4 = vector.broadcast %3 : vector<1x256xf32> to vector<16x256xf32>
    %5 = arith.addf %2, %4 : vector<16x256xf32>
    %c0_5 = arith.constant 0 : index
    %c0_6 = arith.constant 0 : index
    %6 = vector.load %arg5[%c0_5, %c0_6] : memref<16x256xf32, #tpu.memory_space<vmem>>, vector<16x256xf32>
    tpu.vector_store %arg5[%c0_5, %c0_6], %5 {strides = array<i32>} : memref<16x256xf32, #tpu.memory_space<vmem>>, vector<16x256xf32>,
    return
  }
  func.func @transform_0(%arg0: i32, %arg1: i32) -> (i32, i32) {
    %c0_i32 = arith.constant 0 : i32
    %c0_i32_0 = arith.constant 0 : i32
    return %arg0, %c0_i32 : i32, i32
  }
  func.func @transform_1(%arg0: i32, %arg1: i32) -> (i32, i32) {
    %c0_i32 = arith.constant 0 : i32
    %c0_i32_0 = arith.constant 0 : i32
    return %c0_i32, %arg1 : i32, i32
  }
  func.func @transform_2(%arg0: i32, %arg1: i32) -> (i32, i32) {
    %c0_i32 = arith.constant 0 : i32
    %c0_i32_0 = arith.constant 0 : i32
    return %c0_i32, %arg1 : i32, i32
  }
  func.func @transform_3(%arg0: i32, %arg1: i32) -> (i32, i32) {
    %c0_i32 = arith.constant 0 : i32
    return %arg0, %arg1 : i32, i32
  }
}

</mosaic_0001>

<bundles_post_ra>
// kernel: decoder_rnn_forward.3
= control target key start
LH: loop header
LB: loop body
LE: loop exit
PB: predicated region body
PF: predicated region fallthrough
CT: control target
= control target key end

     0   :  { %v265_v2 = vmov 0   ;;  %s355_s0 = inlined_call_operand.vmem [shape: bf16[16,128], index: 0, kind: input, shape index: {}]   ;;  %s356_s1 = inlined_call_operand.vmem [shape: bf16[128,256], index: 1, kind: input, shape index: {}]   ;;  %s357_s2 = inlined_call_operand.vmem [shape: f32[1,256], index: 2, kind: input, shape index: {}]   ;;  %s358_s3 = inlined_call_operand.hbm [shape: f32[16,256], index: 3, kind: output, shape index: {}]  }
   0x1   :  { %v216_v0 = vld [vmem:[%s356_s1 + $0x4] ss:$8 sps:$4 sm:$0xff]   ;;  %v218_v1 = vld [vmem:[%s356_s1] ss:$8 sps:$4 sm:$0xff]   ;;  %164 = vmatprep.mubr.bf16.mxu0 %v265_v2  ;;  %v219_v3 = vld [vmem:[%s356_s1 + $0x14] ss:$8 sps:$4 sm:$0xff]  }
   0x2   :  { %132 = vmatprep.subr.bf16.mxu0 %v216_v0  ;;  %v221_v4 = vld [vmem:[%s356_s1 + $0x10] ss:$8 sps:$4 sm:$0xff]   ;;  %v222_v5 = vld [vmem:[%s356_s1 + $0x24] ss:$8 sps:$4 sm:$0xff]   ;;  %v224_v6 = vld [vmem:[%s356_s1 + $0x20] ss:$8 sps:$4 sm:$0xff]  }
   0x3   :  { %133 = vmatpush1.bf16.msra.mxu0 %v218_v1  ;;  %v225_v7 = vld [vmem:[%s356_s1 + $0x34] ss:$8 sps:$4 sm:$0xff]   ;;  %v227_v8 = vld [vmem:[%s356_s1 + $0x30] ss:$8 sps:$4 sm:$0xff]   ;;  %v228_v9 = vld [vmem:[%s356_s1 + $0x44] ss:$8 sps:$4 sm:$0xff]  }
   0x4   :  { %134 = vmatprep.subr.bf16.mxu0 %v219_v3 }
   0x7   :  { %135 = vmatpush1.bf16.msra.mxu0 %v221_v4 }
   0x8   :  { %136 = vmatprep.subr.bf16.mxu0 %v222_v5 }
   0xb   :  { %137 = vmatpush1.bf16.msra.mxu0 %v224_v6 }
   0xc   :  { %138 = vmatprep.subr.bf16.mxu0 %v225_v7 }
   0xd   :  { %8 = vsyncpa [#allocation3], 0  ;;  %v230_v10 = vld [vmem:[%s356_s1 + $0x40] ss:$8 sps:$4 sm:$0xff]   ;;  %v231_v11 = vld [vmem:[%s356_s1 + $0x54] ss:$8 sps:$4 sm:$0xff]   ;;  %v36_v18 = vlaneseq }
   0xe   :  { %v233_v12 = vld [vmem:[%s356_s1 + $0x50] ss:$8 sps:$4 sm:$0xff]   ;;  %v234_v13 = vld [vmem:[%s356_s1 + $0x64] ss:$8 sps:$4 sm:$0xff]   ;;  %v236_v14 = vld [vmem:[%s356_s1 + $0x60] ss:$8 sps:$4 sm:$0xff]  }
   0xf   :  { %139 = vmatpush1.bf16.msra.mxu0 %v227_v8  ;;  %v237_v15 = vld [vmem:[%s356_s1 + $0x74] ss:$8 sps:$4 sm:$0xff]   ;;  %v239_v16 = vld [vmem:[%s356_s1 + $0x70] ss:$8 sps:$4 sm:$0xff]   ;;  %v240_v17 = vld [vmem:[%s355_s0] sm:$0xff]   ;;  %v37_v19 = vshrl.u32 %v36_v18, 7 }
  0x10   :  { %140 = vmatprep.subr.bf16.mxu0 %v228_v9  ;;  %v34_v21 = vld [vmem:[%s357_s2] sm:$0x3]  ;;  %s266_s21 = smov [#allocation2]  }
  0x11   :  { %v38_v20 = vsub.s32 0, %v37_v19  ;;  %v42_v22 = vsub.s32 1, %v37_v19  ;;  %s184_s1 = sshll.u32 %s266_s21, 4  ;;  %s185_s1 = int_to_ptr.vmem [resolvable:$true] %s184_s1 }
  0x12   :  { %s241_s0 = scalar_lea.vmem %s185_s1, 512  ;;  %p246_p1 = scmp.lt.s32.totalorder %s185_s1, %s185_s1 }
  0x13   :  { %141 = vmatpush1.bf16.msra.mxu0 %v230_v10  ;;  %v39_v23 = vrot.slane %v34_v21, %v38_v20  ;;  %v43_v24 = vrot.slane %v34_v21, %v42_v22  ;;  %p242_p0 = scmp.ne.s32.totalorder %s185_s1, %s241_s0  ;;  %p247_p2 = scmp.lt.s32.totalorder %s241_s0, %s241_s0 }
  0x14   :  { %142 = vmatprep.subr.bf16.mxu0 %v231_v11 }
  0x15   :  { %p248_p3 = por %p247_p2, %p246_p1 }
  0x17   :  { %143 = vmatpush1.bf16.msra.mxu0 %v233_v12  ;;  %p249_p4 = pnand %p248_p3, %p242_p0 }
  0x18   :  { %144 = vmatprep.subr.bf16.mxu0 %v234_v13 }
  0x1b   :  { %145 = vmatpush1.bf16.msra.mxu0 %v236_v14 }
  0x1c   :  { %146 = vmatprep.subr.bf16.mxu0 %v237_v15 }
  0x1f   :  { %147 = vmatpush1.bf16.msra.mxu0 %v239_v16 }
  0x22   :  { %165 = vmatmul.mubr.bf16.vlgmr.msra.gmra.mrb[0].mxu0 %v240_v17 }
  0xf5   :  { %v166_v25 = vpop.f32.mrb[0].mxu0 }
  0xf6   :  { %v167_v26 = vadd.f32 %v166_v25, %v39_v23  ;;  %v168_v27 = vpop.f32.mrb[1].mxu0 }
  0xf7   :  { %v169_v28 = vadd.f32 %v168_v27, %v43_v24  ;;  %v170_v29 = vpop.f32.mrb[2].mxu0 }
  0xf8   :  { %175 = vst [vmem:[#allocation2] sm:$0xff] %v167_v26  ;;  %v171_v30 = vadd.f32 %v170_v29, %v39_v23  ;;  %v172_v31 = vpop.f32.mrb[3].mxu0 }
  0xf9   :  { %176 = vst [vmem:[#allocation2 + $0x8] sm:$0xff] %v169_v28  ;;  %v173_v32 = vadd.f32 %v172_v31, %v43_v24 }
  0xfa   :  { %177 = vst [vmem:[#allocation2 + $0x10] sm:$0xff] %v171_v30 }
  0xfb   :  { %178 = vst [vmem:[#allocation2 + $0x18] sm:$0xff] %v173_v32 }
  0xfc   :  { %252 = shalt.err (!%p249_p4)
}
  0xfd   :  { %s253_s23 = scalar_lea.hbm %s358_s3, 512 }
  0xfe   :  { %p254_p5 = scmp.ne.s32.totalorder %s358_s3, %s253_s23  ;;  %p257_p6 = scmp.lt.u32.totalorder %s253_s23, %s358_s3 }
 0x100   :  { %p259_p7 = pnand %p257_p6, %p254_p5 }
 0x102   :  { %262 = shalt.err (!%p259_p7)
}
 0x103   :  { %s267_s28 = smov 256   ;;  %s268_s29 = smov 16  }
 0x104   :  { %190 = dma.vmem_to_hbm [thread:$0]  %s185_s1, 512, %s358_s3, [#allocation3], %s267_s28, %s267_s28, %s268_s29  }
 0x105   :  { %263 = dma.done.wait [#allocation3], 512  }
 0x106   :  { %264 = vsyncadd [#allocation3], 4294966784 }
 0x107   :  { %194 = vsyncpa [#allocation3], 1 }

// kernel: decoder_rnn_forward.2
= control target key start
LH: loop header
LB: loop body
LE: loop exit
PB: predicated region body
PF: predicated region fallthrough
CT: control target
= control target key end

     0   :  { %v2588_v1 = vmov 0   ;;  %s3494_s1 = inlined_call_operand.vmem [shape: bf16[128,512], index: 1, kind: input, shape index: {}]   ;;  %s3495_s0 = inlined_call_operand.vmem [shape: bf16[8,16,128], index: 0, kind: input, shape index: {}]   ;;  %s3496_s2 = inlined_call_operand.vmem [shape: bf16[128,512], index: 2, kind: input, shape index: {}]   ;;  %s3497_s3 = inlined_call_operand.vmem [shape: f32[1,512], index: 3, kind: input, shape index: {}]   ;;  %s3498_s4 = inlined_call_operand.vmem [shape: bf16[8,16,128], index: 4, kind: output, shape index: {}]  }
   0x1   :  { %v2292_v0 = vld [vmem:[%s3494_s1 + $0x4] ss:$16 sps:$4 sm:$0xff]   ;;  %336 = vmatprep.mubr.bf16.mxu0 %v2588_v1  ;;  %449 = vmatprep.mubr.bf16.mxu1 %v2588_v1  ;;  %v2294_v2 = vld [vmem:[%s3494_s1 + $0xc] ss:$16 sps:$4 sm:$0xff]   ;;  %v2296_v3 = vld [vmem:[%s3494_s1] ss:$16 sps:$4 sm:$0xff]  }
   0x2   :  { %304 = vmatprep.subr.bf16.mxu0 %v2292_v0  ;;  %v2297_v4 = vld [vmem:[%s3494_s1 + $0x8] ss:$16 sps:$4 sm:$0xff]   ;;  %417 = vmatprep.subr.bf16.mxu1 %v2294_v2  ;;  %v2298_v5 = vld [vmem:[%s3494_s1 + $0x24] ss:$16 sps:$4 sm:$0xff]   ;;  %v2300_v6 = vld [vmem:[%s3494_s1 + $0x2c] ss:$16 sps:$4 sm:$0xff]  }
   0x3   :  { %305 = vmatpush1.bf16.msra.mxu0 %v2296_v3  ;;  %418 = vmatpush1.bf16.msra.mxu1 %v2297_v4  ;;  %v2302_v7 = vld [vmem:[%s3494_s1 + $0x20] ss:$16 sps:$4 sm:$0xff]   ;;  %v2303_v8 = vld [vmem:[%s3494_s1 + $0x28] ss:$16 sps:$4 sm:$0xff]   ;;  %v2304_v9 = vld [vmem:[%s3494_s1 + $0x44] ss:$16 sps:$4 sm:$0xff]  }
   0x4   :  { %306 = vmatprep.subr.bf16.mxu0 %v2298_v5  ;;  %419 = vmatprep.subr.bf16.mxu1 %v2300_v6  ;;  %v2306_v10 = vld [vmem:[%s3494_s1 + $0x4c] ss:$16 sps:$4 sm:$0xff]   ;;  %v2308_v11 = vld [vmem:[%s3494_s1 + $0x40] ss:$16 sps:$4 sm:$0xff]   ;;  %v2309_v12 = vld [vmem:[%s3494_s1 + $0x48] ss:$16 sps:$4 sm:$0xff]  }
   0x5   :  { %v2310_v13 = vld [vmem:[%s3494_s1 + $0x64] ss:$16 sps:$4 sm:$0xff]   ;;  %v2312_v14 = vld [vmem:[%s3494_s1 + $0x6c] ss:$16 sps:$4 sm:$0xff]   ;;  %v2314_v15 = vld [vmem:[%s3494_s1 + $0x60] ss:$16 sps:$4 sm:$0xff]  }
   0x6   :  { %v2315_v16 = vld [vmem:[%s3494_s1 + $0x68] ss:$16 sps:$4 sm:$0xff]   ;;  %v2316_v17 = vld [vmem:[%s3494_s1 + $0x84] ss:$16 sps:$4 sm:$0xff]   ;;  %v2318_v18 = vld [vmem:[%s3494_s1 + $0x8c] ss:$16 sps:$4 sm:$0xff]  }
   0x7   :  { %307 = vmatpush1.bf16.msra.mxu0 %v2302_v7  ;;  %420 = vmatpush1.bf16.msra.mxu1 %v2303_v8  ;;  %v2320_v19 = vld [vmem:[%s3494_s1 + $0x80] ss:$16 sps:$4 sm:$0xff]   ;;  %v2321_v20 = vld [vmem:[%s3494_s1 + $0x88] ss:$16 sps:$4 sm:$0xff]   ;;  %v2322_v21 = vld [vmem:[%s3494_s1 + $0xa4] ss:$16 sps:$4 sm:$0xff]  }
   0x8   :  { %308 = vmatprep.subr.bf16.mxu0 %v2304_v9  ;;  %421 = vmatprep.subr.bf16.mxu1 %v2306_v10  ;;  %v2324_v22 = vld [vmem:[%s3494_s1 + $0xac] ss:$16 sps:$4 sm:$0xff]   ;;  %v2326_v23 = vld [vmem:[%s3494_s1 + $0xa0] ss:$16 sps:$4 sm:$0xff]   ;;  %v2327_v24 = vld [vmem:[%s3494_s1 + $0xa8] ss:$16 sps:$4 sm:$0xff]  }
   0x9   :  { %v2328_v25 = vld [vmem:[%s3494_s1 + $0xc4] ss:$16 sps:$4 sm:$0xff]   ;;  %v2330_v26 = vld [vmem:[%s3494_s1 + $0xcc] ss:$16 sps:$4 sm:$0xff]   ;;  %v2332_v27 = vld [vmem:[%s3494_s1 + $0xc0] ss:$16 sps:$4 sm:$0xff]  }
   0xa   :  { %v2333_v28 = vld [vmem:[%s3494_s1 + $0xc8] ss:$16 sps:$4 sm:$0xff]   ;;  %v2334_v29 = vld [vmem:[%s3494_s1 + $0xe4] ss:$16 sps:$4 sm:$0xff]   ;;  %v2336_v30 = vld [vmem:[%s3494_s1 + $0xec] ss:$16 sps:$4 sm:$0xff]  }
   0xb   :  { %309 = vmatpush1.bf16.msra.mxu0 %v2308_v11  ;;  %422 = vmatpush1.bf16.msra.mxu1 %v2309_v12  ;;  %v2338_v31 = vld [vmem:[%s3494_s1 + $0xe0] ss:$16 sps:$4 sm:$0xff]   ;;  %v2339_v32 = vld [vmem:[%s3494_s1 + $0xe8] ss:$16 sps:$4 sm:$0xff]   ;;  %v2716_v33 = vld [vmem:[%s3496_s2 + $0x4] ss:$16 sps:$4 sm:$0xff]   ;;  %v76_v11 = vlaneseq }
   0xc   :  { %310 = vmatprep.subr.bf16.mxu0 %v2310_v13  ;;  %423 = vmatprep.subr.bf16.mxu1 %v2312_v14  ;;  %v2721_v34 = vld [vmem:[%s3496_s2 + $0xc] ss:$16 sps:$4 sm:$0xff]   ;;  %v2340_v35 = vld [vmem:[%s3495_s0] sm:$0xff]   ;;  %v2741_v38 = vld [vmem:[%s3496_s2 + $0x8] ss:$16 sps:$4 sm:$0xff]   ;;  %v2589_v10 = vmov 0.0|0.0  }
   0xd   :  { %v2729_v36 = vld [vmem:[%s3496_s2] ss:$16 sps:$4 sm:$0xff]   ;;  %v2736_v37 = vld [vmem:[%s3496_s2 + $0x24] ss:$16 sps:$4 sm:$0xff]   ;;  %v2746_v39 = vld [vmem:[%s3496_s2 + $0x2c] ss:$16 sps:$4 sm:$0xff]  }
   0xe   :  { %v2753_v40 = vld [vmem:[%s3496_s2 + $0x20] ss:$16 sps:$4 sm:$0xff]   ;;  %v2760_v41 = vld [vmem:[%s3496_s2 + $0x44] ss:$16 sps:$4 sm:$0xff]   ;;  %v2766_v42 = vld [vmem:[%s3496_s2 + $0x28] ss:$16 sps:$4 sm:$0xff]  }
   0xf   :  { %311 = vmatpush1.bf16.msra.mxu0 %v2314_v15  ;;  %424 = vmatpush1.bf16.msra.mxu1 %v2315_v16  ;;  %v2346_v43 = vld [vmem:[%s3495_s0 + $0x8] sm:$0xff]   ;;  %v2777_v44 = vld [vmem:[%s3496_s2 + $0x40] ss:$16 sps:$4 sm:$0xff]   ;;  %v2787_v46 = vld [vmem:[%s3496_s2 + $0x64] ss:$16 sps:$4 sm:$0xff]   ;;  %v77_v12 = vshrl.u32 %v76_v11, 7 }
  0x10   :  { %312 = vmatprep.subr.bf16.mxu0 %v2316_v17  ;;  %425 = vmatprep.subr.bf16.mxu1 %v2318_v18  ;;  %v2782_v45 = vld [vmem:[%s3496_s2 + $0x4c] ss:$16 sps:$4 sm:$0xff]   ;;  %v2793_v47 = vld [vmem:[%s3496_s2 + $0x48] ss:$16 sps:$4 sm:$0xff]   ;;  %v2807_v49 = vld [vmem:[%s3496_s2 + $0x60] ss:$16 sps:$4 sm:$0xff]  }
  0x11   :  { %v2798_v48 = vld [vmem:[%s3496_s2 + $0x6c] ss:$16 sps:$4 sm:$0xff]   ;;  %v2812_v50 = vld [vmem:[%s3496_s2 + $0x84] ss:$16 sps:$4 sm:$0xff]   ;;  %v2819_v51 = vld [vmem:[%s3496_s2 + $0x68] ss:$16 sps:$4 sm:$0xff]  }
  0x12   :  { %v2353_v52 = vld [vmem:[%s3495_s0 + $0x10] sm:$0xff]   ;;  %v2834_v54 = vld [vmem:[%s3496_s2 + $0x8c] ss:$16 sps:$4 sm:$0xff]   ;;  %v2846_v56 = vld [vmem:[%s3496_s2 + $0x88] ss:$16 sps:$4 sm:$0xff]   ;;  %v78_v13 = vsub.s32 0, %v77_v12 }
  0x13   :  { %313 = vmatpush1.bf16.msra.mxu0 %v2320_v19  ;;  %426 = vmatpush1.bf16.msra.mxu1 %v2321_v20  ;;  %v2828_v53 = vld [vmem:[%s3496_s2 + $0x80] ss:$16 sps:$4 sm:$0xff]   ;;  %v2841_v55 = vld [vmem:[%s3496_s2 + $0xa4] ss:$16 sps:$4 sm:$0xff]   ;;  %v2851_v57 = vld [vmem:[%s3496_s2 + $0xac] ss:$16 sps:$4 sm:$0xff]  }
  0x14   :  { %314 = vmatprep.subr.bf16.mxu0 %v2322_v21  ;;  %427 = vmatprep.subr.bf16.mxu1 %v2324_v22  ;;  %v2860_v58 = vld [vmem:[%s3496_s2 + $0xa0] ss:$16 sps:$4 sm:$0xff]   ;;  %v2867_v59 = vld [vmem:[%s3496_s2 + $0xc4] ss:$16 sps:$4 sm:$0xff]   ;;  %v2872_v60 = vld [vmem:[%s3496_s2 + $0xa8] ss:$16 sps:$4 sm:$0xff]  }
  0x15   :  { %v2360_v61 = vld [vmem:[%s3495_s0 + $0x18] sm:$0xff]   ;;  %v2882_v62 = vld [vmem:[%s3496_s2 + $0xc0] ss:$16 sps:$4 sm:$0xff]   ;;  %v2894_v0 = vld [vmem:[%s3496_s2 + $0xe4] ss:$16 sps:$4 sm:$0xff]   ;;  %v82_v15 = vsub.s32 1, %v77_v12 }
  0x16   :  { %v2887_v63 = vld [vmem:[%s3496_s2 + $0xcc] ss:$16 sps:$4 sm:$0xff]   ;;  %v2899_v2 = vld [vmem:[%s3496_s2 + $0xc8] ss:$16 sps:$4 sm:$0xff]   ;;  %v2913_v4 = vld [vmem:[%s3496_s2 + $0xe0] ss:$16 sps:$4 sm:$0xff]  }
  0x17   :  { %315 = vmatpush1.bf16.msra.mxu0 %v2326_v23  ;;  %428 = vmatpush1.bf16.msra.mxu1 %v2327_v24  ;;  %v2904_v3 = vld [vmem:[%s3496_s2 + $0xec] ss:$16 sps:$4 sm:$0xff]   ;;  %v2920_v5 = vld [vmem:[%s3496_s2 + $0xe8] ss:$16 sps:$4 sm:$0xff]   ;;  %v2367_v6 = vld [vmem:[%s3495_s0 + $0x20] sm:$0xff]   ;;  %v86_v17 = vsub.s32 2, %v77_v12 }
  0x18   :  { %316 = vmatprep.subr.bf16.mxu0 %v2328_v25  ;;  %429 = vmatprep.subr.bf16.mxu1 %v2330_v26  ;;  %v2374_v7 = vld [vmem:[%s3495_s0 + $0x28] sm:$0xff]   ;;  %v2381_v8 = vld [vmem:[%s3495_s0 + $0x30] sm:$0xff]   ;;  %v2388_v9 = vld [vmem:[%s3495_s0 + $0x38] sm:$0xff]  }
  0x19   :  { %v74_v14 = vld [vmem:[%s3497_s3] sm:$0xf] }
  0x1a   :  { %v2984_v16 = vrot.slane %v74_v14, %v78_v13  ;;  %v2986_v18 = vrot.slane %v74_v14, %v82_v15  ;;  %v2989_v22 = vrot.slane %v74_v14, %v86_v17 }
  0x1b   :  { %317 = vmatpush1.bf16.msra.mxu0 %v2332_v27  ;;  %430 = vmatpush1.bf16.msra.mxu1 %v2333_v28 }
  0x1c   :  { %318 = vmatprep.subr.bf16.mxu0 %v2334_v29  ;;  %431 = vmatprep.subr.bf16.mxu1 %v2336_v30 }
  0x1f   :  { %319 = vmatpush1.bf16.msra.mxu0 %v2338_v31  ;;  %432 = vmatpush1.bf16.msra.mxu1 %v2339_v32 }
  0x20   :  { %799 = vmatprep.subr.bf16.mxu0 %v2716_v33  ;;  %842 = vmatprep.subr.bf16.mxu1 %v2721_v34 }
  0x22   :  { %337 = vmatmul.mubr.bf16.vlgmr.msra.gmra.mrb[0].mxu0 %v2340_v35  ;;  %450 = vmatmul.mubr.bf16.vlgmr.msra.gmra.mrb[0].mxu1 %v2340_v35  ;;  %v90_v35 = vsub.s32 3, %v77_v12 }
  0x23   :  { %800 = vmatpush1.bf16.msra.mxu0 %v2729_v36  ;;  %346 = vmatprep.mubr.bf16.mxu0 %v2588_v1 }
  0x24   :  { %459 = vmatprep.mubr.bf16.mxu1 %v2588_v1  ;;  %801 = vmatprep.subr.bf16.mxu0 %v2736_v37 }
  0x25   :  { %843 = vmatpush1.bf16.msra.mxu1 %v2741_v38 }
  0x26   :  { %844 = vmatprep.subr.bf16.mxu1 %v2746_v39 }
  0x27   :  { %802 = vmatpush1.bf16.msra.mxu0 %v2753_v40 }
  0x28   :  { %803 = vmatprep.subr.bf16.mxu0 %v2760_v41 }
  0x29   :  { %845 = vmatpush1.bf16.msra.mxu1 %v2766_v42 }
  0x2a   :  { %347 = vmatmul.mubr.bf16.gmra.mrb[4].mxu0 %v2346_v43  ;;  %460 = vmatmul.mubr.bf16.gmra.mrb[4].mxu1 %v2346_v43 }
  0x2b   :  { %356 = vmatprep.mubr.bf16.mxu0 %v2588_v1  ;;  %469 = vmatprep.mubr.bf16.mxu1 %v2588_v1 }
  0x2c   :  { %804 = vmatpush1.bf16.msra.mxu0 %v2777_v44  ;;  %846 = vmatprep.subr.bf16.mxu1 %v2782_v45 }
  0x2d   :  { %805 = vmatprep.subr.bf16.mxu0 %v2787_v46  ;;  %847 = vmatpush1.bf16.msra.mxu1 %v2793_v47 }
  0x2e   :  { %848 = vmatprep.subr.bf16.mxu1 %v2798_v48 }
  0x30   :  { %806 = vmatpush1.bf16.msra.mxu0 %v2807_v49 }
  0x31   :  { %807 = vmatprep.subr.bf16.mxu0 %v2812_v50  ;;  %849 = vmatpush1.bf16.msra.mxu1 %v2819_v51 }
  0x32   :  { %357 = vmatmul.mubr.bf16.gmra.mrb[8].mxu0 %v2353_v52  ;;  %470 = vmatmul.mubr.bf16.gmra.mrb[8].mxu1 %v2353_v52 }
  0x33   :  { %366 = vmatprep.mubr.bf16.mxu0 %v2588_v1  ;;  %479 = vmatprep.mubr.bf16.mxu1 %v2588_v1 }
  0x34   :  { %808 = vmatpush1.bf16.msra.mxu0 %v2828_v53  ;;  %850 = vmatprep.subr.bf16.mxu1 %v2834_v54 }
  0x35   :  { %809 = vmatprep.subr.bf16.mxu0 %v2841_v55  ;;  %851 = vmatpush1.bf16.msra.mxu1 %v2846_v56 }
  0x36   :  { %852 = vmatprep.subr.bf16.mxu1 %v2851_v57 }
  0x38   :  { %810 = vmatpush1.bf16.msra.mxu0 %v2860_v58 }
  0x39   :  { %811 = vmatprep.subr.bf16.mxu0 %v2867_v59  ;;  %853 = vmatpush1.bf16.msra.mxu1 %v2872_v60 }
  0x3a   :  { %367 = vmatmul.mubr.bf16.gmra.mrb[12].mxu0 %v2360_v61  ;;  %480 = vmatmul.mubr.bf16.gmra.mrb[12].mxu1 %v2360_v61 }
  0x3b   :  { %376 = vmatprep.mubr.bf16.mxu0 %v2588_v1  ;;  %489 = vmatprep.mubr.bf16.mxu1 %v2588_v1 }
  0x3c   :  { %812 = vmatpush1.bf16.msra.mxu0 %v2882_v62  ;;  %854 = vmatprep.subr.bf16.mxu1 %v2887_v63 }
  0x3d   :  { %813 = vmatprep.subr.bf16.mxu0 %v2894_v0  ;;  %855 = vmatpush1.bf16.msra.mxu1 %v2899_v2 }
  0x3e   :  { %856 = vmatprep.subr.bf16.mxu1 %v2904_v3 }
  0x40   :  { %814 = vmatpush1.bf16.msra.mxu0 %v2913_v4 }
  0x41   :  { %857 = vmatpush1.bf16.msra.mxu1 %v2920_v5  ;;  %948 = vmatprep.subr.bf16.mxu0 %v2716_v33 }
  0x42   :  { %377 = vmatmul.mubr.bf16.gmra.mrb[16].mxu0 %v2367_v6  ;;  %490 = vmatmul.mubr.bf16.gmra.mrb[16].mxu1 %v2367_v6 }
  0x43   :  { %386 = vmatprep.mubr.bf16.mxu0 %v2588_v1  ;;  %499 = vmatprep.mubr.bf16.mxu1 %v2588_v1 }
  0x44   :  { %991 = vmatprep.subr.bf16.mxu1 %v2721_v34 }
  0x4a   :  { %387 = vmatmul.mubr.bf16.gmra.mrb[20].mxu0 %v2374_v7  ;;  %500 = vmatmul.mubr.bf16.gmra.mrb[20].mxu1 %v2374_v7  ;;  %v2995_v7 = vrot.slane %v74_v14, %v90_v35 }
  0x4b   :  { %396 = vmatprep.mubr.bf16.mxu0 %v2588_v1  ;;  %509 = vmatprep.mubr.bf16.mxu1 %v2588_v1 }
  0x52   :  { %397 = vmatmul.mubr.bf16.gmra.mrb[24].mxu0 %v2381_v8  ;;  %510 = vmatmul.mubr.bf16.gmra.mrb[24].mxu1 %v2381_v8 }
  0x53   :  { %406 = vmatprep.mubr.bf16.mxu0 %v2588_v1  ;;  %519 = vmatprep.mubr.bf16.mxu1 %v2588_v1 }
  0x5a   :  { %407 = vmatmul.mubr.bf16.gmra.mrb[28].mxu0 %v2388_v9  ;;  %520 = vmatmul.mubr.bf16.gmra.mrb[28].mxu1 %v2388_v9 }
  0x5b   :  { %831 = vmatprep.mubr.bf16.mxu0 %v2588_v1  ;;  %874 = vmatprep.mubr.bf16.mxu1 %v2588_v1 }
  0x62   :  { %832 = vmatmul.mubr.bf16.vlgmr.msra.gmra.mrb[0].mxu0 %v2589_v10  ;;  %875 = vmatmul.mubr.bf16.vlgmr.msra.gmra.mrb[0].mxu1 %v2589_v10 }
  0x63   :  { %949 = vmatpush1.bf16.msra.mxu0 %v2729_v36  ;;  %992 = vmatpush1.bf16.msra.mxu1 %v2741_v38 }
  0x64   :  { %950 = vmatprep.subr.bf16.mxu0 %v2736_v37  ;;  %993 = vmatprep.subr.bf16.mxu1 %v2746_v39 }
  0x65   :  { %980 = vmatprep.mubr.bf16.mxu0 %v2588_v1  ;;  %1023 = vmatprep.mubr.bf16.mxu1 %v2588_v1 }
  0x67   :  { %951 = vmatpush1.bf16.msra.mxu0 %v2753_v40  ;;  %994 = vmatpush1.bf16.msra.mxu1 %v2766_v42 }
  0x68   :  { %952 = vmatprep.subr.bf16.mxu0 %v2760_v41  ;;  %995 = vmatprep.subr.bf16.mxu1 %v2782_v45 }
  0x6b   :  { %953 = vmatpush1.bf16.msra.mxu0 %v2777_v44  ;;  %996 = vmatpush1.bf16.msra.mxu1 %v2793_v47 }
  0x6c   :  { %954 = vmatprep.subr.bf16.mxu0 %v2787_v46  ;;  %997 = vmatprep.subr.bf16.mxu1 %v2798_v48 }
  0x6f   :  { %955 = vmatpush1.bf16.msra.mxu0 %v2807_v49  ;;  %998 = vmatpush1.bf16.msra.mxu1 %v2819_v51 }
  0x70   :  { %956 = vmatprep.subr.bf16.mxu0 %v2812_v50  ;;  %999 = vmatprep.subr.bf16.mxu1 %v2834_v54 }
  0x73   :  { %957 = vmatpush1.bf16.msra.mxu0 %v2828_v53  ;;  %1000 = vmatpush1.bf16.msra.mxu1 %v2846_v56 }
  0x74   :  { %958 = vmatprep.subr.bf16.mxu0 %v2841_v55  ;;  %1001 = vmatprep.subr.bf16.mxu1 %v2851_v57 }
  0x77   :  { %959 = vmatpush1.bf16.msra.mxu0 %v2860_v58  ;;  %1002 = vmatpush1.bf16.msra.mxu1 %v2872_v60 }
  0x78   :  { %960 = vmatprep.subr.bf16.mxu0 %v2867_v59  ;;  %1003 = vmatprep.subr.bf16.mxu1 %v2887_v63 }
  0x7b   :  { %961 = vmatpush1.bf16.msra.mxu0 %v2882_v62  ;;  %1004 = vmatpush1.bf16.msra.mxu1 %v2899_v2 }
  0x7c   :  { %962 = vmatprep.subr.bf16.mxu0 %v2894_v0  ;;  %1005 = vmatprep.subr.bf16.mxu1 %v2904_v3 }
  0x7f   :  { %963 = vmatpush1.bf16.msra.mxu0 %v2913_v4  ;;  %1006 = vmatpush1.bf16.msra.mxu1 %v2920_v5 }
  0x80   :  { %1098 = vmatprep.subr.bf16.mxu0 %v2716_v33  ;;  %1141 = vmatprep.subr.bf16.mxu1 %v2721_v34 }
 0x135   :  { %v833_v19 = vpop.f32.mrb[0].mxu0  ;;  %v876_v20 = vpop.f32.mrb[0].mxu1 }
 0x136   :  { %v2162_v21 = vadd.f32 %v833_v19, %v2984_v16  ;;  %v835_v23 = vpop.f32.mrb[1].mxu0  ;;  %v878_v24 = vpop.f32.mrb[1].mxu1  ;;  %v2194_v52 = vadd.f32 %v876_v20, %v2989_v22 }
 0x137   :  { %v2163_v25 = vadd.f32 %v835_v23, %v2986_v18  ;;  %v837_v26 = vpop.f32.mrb[2].mxu0  ;;  %v880_v27 = vpop.f32.mrb[2].mxu1  ;;  %v2195_v9 = vadd.f32 %v878_v24, %v2995_v7 }
 0x138   :  { %v893_v28 = vmul.f32 0.5, %v2162_v21  ;;  %v2164_v29 = vadd.f32 %v837_v26, %v2984_v16  ;;  %v839_v30 = vpop.f32.mrb[3].mxu0  ;;  %v882_v31 = vpop.f32.mrb[3].mxu1  ;;  %v2196_v8 = vadd.f32 %v880_v27, %v2989_v22 }
 0x139   :  { %v901_v32 = vmul.f32 0.5, %v2163_v25  ;;  %v2165_v43 = vadd.f32 %v839_v30, %v2986_v18  ;;  %v2197_v10 = vadd.f32 %v882_v31, %v2995_v7  ;;  %v911_v15 = vmul.f32 0.5, %v2195_v9 }
 0x13a   :  { %2396 = vtanh.f32 %v893_v28  ;;  %v894_v61 = vmul.f32 0.5, %v2164_v29 }
 0x13b   :  { %2398 = vtanh.f32 %v901_v32  ;;  %v902_v6 = vmul.f32 0.5, %v2165_v43  ;;  %v912_v19 = vmul.f32 0.5, %v2197_v10 }
 0x13c   :  { %2400 = vtanh.f32 %v894_v61 }
 0x13d   :  { %2402 = vtanh.f32 %v2194_v52 }
 0x13e   :  { %2404 = vtanh.f32 %v902_v6 }
 0x13f   :  { %2406 = vtanh.f32 %v2196_v8 }
 0x140   :  { %2408 = vtanh.f32 %v911_v15 }
 0x141   :  { %2410 = vtanh.f32 %v912_v19 }
 0x144   :  { %v2397_v11 = vpop.eup %2396 }
 0x145   :  { %v2399_v12 = vpop.eup %2398  ;;  %v897_v13 = vmul.f32 0.5, %v2397_v11 }
 0x146   :  { %v905_v17 = vmul.f32 0.5, %v2399_v12  ;;  %v2401_v20 = vpop.eup %2400 }
 0x147   :  { %v899_v21 = vadd.f32 0.5, %v897_v13  ;;  %v2403_v14 = vpop.eup %2402  ;;  %v898_v25 = vmul.f32 0.5, %v2401_v20 }
 0x148   :  { %v907_v23 = vadd.f32 0.5, %v905_v17  ;;  %v2405_v26 = vpop.eup %2404 }
 0x149   :  { %v921_v27 = vmul.f32 %v2403_v14, %v899_v21  ;;  %v900_v29 = vadd.f32 0.5, %v898_v25  ;;  %v906_v24 = vmul.f32 0.5, %v2405_v26  ;;  %v2407_v30 = vpop.eup %2406 }
 0x14a   :  { %v919_v28 = vmul.f32 0.0, %v907_v23  ;;  %v2409_v61 = vpop.eup %2408 }
 0x14b   :  { %v908_v32 = vadd.f32 0.5, %v906_v24  ;;  %v922_v35 = vmul.f32 %v2407_v30, %v900_v29  ;;  %v2411_v6 = vpop.eup %2410  ;;  %v915_v8 = vmul.f32 0.5, %v2409_v61 }
 0x14c   :  { %v3000_v31 = vadd.f32 %v921_v27, %v919_v28  ;;  %v916_v9 = vmul.f32 0.5, %v2411_v6 }
 0x14d   :  { %v920_v43 = vmul.f32 0.0, %v908_v32  ;;  %v917_v11 = vadd.f32 0.5, %v915_v8 }
 0x14e   :  { %2412 = vtanh.f32 %v3000_v31  ;;  %v918_v12 = vadd.f32 0.5, %v916_v9 }
 0x14f   :  { %v3003_v52 = vadd.f32 %v922_v35, %v920_v43 }
 0x151   :  { %2414 = vtanh.f32 %v3003_v52 }
 0x158   :  { %v2413_v10 = vpop.eup %2412 }
 0x159   :  { %v927_v15 = vmul.f32 %v2413_v10, %v917_v11 }
 0x15b   :  { %v2415_v13 = vpop.eup %2414 }
 0x15c   :  { %v928_v17 = vmul.f32 %v2415_v13, %v918_v12 }
 0x15e   :  { %v929_v19 = vpack.c.bf16 %v928_v17, %v927_v15 }
 0x160   :  { %2119 = vst [vmem:[%s3498_s4] sm:$0xff] %v929_v19   ;;  %981 = vmatmul.mubr.bf16.vlgmr.msra.gmra.mrb[4].mxu0 %v929_v19  ;;  %1024 = vmatmul.mubr.bf16.vlgmr.msra.gmra.mrb[4].mxu1 %v929_v19 }
 0x161   :  { %1099 = vmatpush1.bf16.msra.mxu0 %v2729_v36  ;;  %1142 = vmatpush1.bf16.msra.mxu1 %v2741_v38 }
 0x162   :  { %1100 = vmatprep.subr.bf16.mxu0 %v2736_v37  ;;  %1143 = vmatprep.subr.bf16.mxu1 %v2746_v39 }
 0x163   :  { %1130 = vmatprep.mubr.bf16.mxu0 %v2588_v1  ;;  %1173 = vmatprep.mubr.bf16.mxu1 %v2588_v1 }
 0x165   :  { %1101 = vmatpush1.bf16.msra.mxu0 %v2753_v40  ;;  %1144 = vmatpush1.bf16.msra.mxu1 %v2766_v42 }
 0x166   :  { %1102 = vmatprep.subr.bf16.mxu0 %v2760_v41  ;;  %1145 = vmatprep.subr.bf16.mxu1 %v2782_v45 }
 0x169   :  { %1103 = vmatpush1.bf16.msra.mxu0 %v2777_v44  ;;  %1146 = vmatpush1.bf16.msra.mxu1 %v2793_v47 }
 0x16a   :  { %1104 = vmatprep.subr.bf16.mxu0 %v2787_v46  ;;  %1147 = vmatprep.subr.bf16.mxu1 %v2798_v48 }
 0x16d   :  { %1105 = vmatpush1.bf16.msra.mxu0 %v2807_v49  ;;  %1148 = vmatpush1.bf16.msra.mxu1 %v2819_v51 }
 0x16e   :  { %1106 = vmatprep.subr.bf16.mxu0 %v2812_v50  ;;  %1149 = vmatprep.subr.bf16.mxu1 %v2834_v54 }
 0x171   :  { %1107 = vmatpush1.bf16.msra.mxu0 %v2828_v53  ;;  %1150 = vmatpush1.bf16.msra.mxu1 %v2846_v56 }
 0x172   :  { %1108 = vmatprep.subr.bf16.mxu0 %v2841_v55  ;;  %1151 = vmatprep.subr.bf16.mxu1 %v2851_v57 }
 0x175   :  { %1109 = vmatpush1.bf16.msra.mxu0 %v2860_v58  ;;  %1152 = vmatpush1.bf16.msra.mxu1 %v2872_v60 }
 0x176   :  { %1110 = vmatprep.subr.bf16.mxu0 %v2867_v59  ;;  %1153 = vmatprep.subr.bf16.mxu1 %v2887_v63 }
 0x179   :  { %1111 = vmatpush1.bf16.msra.mxu0 %v2882_v62  ;;  %1154 = vmatpush1.bf16.msra.mxu1 %v2899_v2 }
 0x17a   :  { %1112 = vmatprep.subr.bf16.mxu0 %v2894_v0  ;;  %1155 = vmatprep.subr.bf16.mxu1 %v2904_v3 }
 0x17d   :  { %1113 = vmatpush1.bf16.msra.mxu0 %v2913_v4  ;;  %1156 = vmatpush1.bf16.msra.mxu1 %v2920_v5 }
 0x17e   :  { %1248 = vmatprep.subr.bf16.mxu0 %v2716_v33  ;;  %1291 = vmatprep.subr.bf16.mxu1 %v2721_v34 }
 0x233   :  { %v982_v20 = vpop.f32.mrb[4].mxu0  ;;  %v1025_v21 = vpop.f32.mrb[4].mxu1 }
 0x234   :  { %v2166_v14 = vadd.f32 %v982_v20, %v2984_v16  ;;  %v984_v23 = vpop.f32.mrb[5].mxu0  ;;  %v1027_v25 = vpop.f32.mrb[5].mxu1  ;;  %v2198_v61 = vadd.f32 %v1025_v21, %v2989_v22 }
 0x235   :  { %v2167_v26 = vadd.f32 %v984_v23, %v2986_v18  ;;  %v986_v27 = vpop.f32.mrb[6].mxu0  ;;  %v1029_v28 = vpop.f32.mrb[6].mxu1  ;;  %v2199_v10 = vadd.f32 %v1027_v25, %v2995_v7 }
 0x236   :  { %v1042_v29 = vmul.f32 0.5, %v2166_v14  ;;  %v2168_v24 = vadd.f32 %v986_v27, %v2984_v16  ;;  %v988_v30 = vpop.f32.mrb[7].mxu0  ;;  %v1031_v32 = vpop.f32.mrb[7].mxu1  ;;  %v2200_v9 = vadd.f32 %v1029_v28, %v2989_v22 }
 0x237   :  { %v1050_v35 = vmul.f32 0.5, %v2167_v26  ;;  %v2169_v43 = vadd.f32 %v988_v30, %v2986_v18  ;;  %v2201_v11 = vadd.f32 %v1031_v32, %v2995_v7  ;;  %v1060_v17 = vmul.f32 0.5, %v2199_v10 }
 0x238   :  { %2416 = vtanh.f32 %v1042_v29  ;;  %v1043_v6 = vmul.f32 0.5, %v2168_v24 }
 0x239   :  { %2418 = vtanh.f32 %v1050_v35  ;;  %v1051_v8 = vmul.f32 0.5, %v2169_v43  ;;  %v1061_v20 = vmul.f32 0.5, %v2201_v11 }
 0x23a   :  { %2420 = vtanh.f32 %v1043_v6 }
 0x23b   :  { %2422 = vtanh.f32 %v2198_v61 }
 0x23c   :  { %2424 = vtanh.f32 %v1051_v8 }
 0x23d   :  { %2426 = vtanh.f32 %v2200_v9 }
 0x23e   :  { %2428 = vtanh.f32 %v1060_v17 }
 0x23f   :  { %2430 = vtanh.f32 %v1061_v20 }
 0x242   :  { %v2417_v12 = vpop.eup %2416 }
 0x243   :  { %v2419_v13 = vpop.eup %2418  ;;  %v1046_v15 = vmul.f32 0.5, %v2417_v12 }
 0x244   :  { %v1054_v19 = vmul.f32 0.5, %v2419_v13  ;;  %v2421_v21 = vpop.eup %2420 }
 0x245   :  { %v1048_v14 = vadd.f32 0.5, %v1046_v15  ;;  %v2423_v23 = vpop.eup %2422  ;;  %v1047_v27 = vmul.f32 0.5, %v2421_v21 }
 0x246   :  { %v1056_v26 = vadd.f32 0.5, %v1054_v19  ;;  %v2425_v29 = vpop.eup %2424 }
 0x247   :  { %v1070_v28 = vmul.f32 %v2423_v23, %v1048_v14  ;;  %v1049_v25 = vadd.f32 0.5, %v1047_v27  ;;  %v1055_v30 = vmul.f32 0.5, %v2425_v29  ;;  %v2427_v32 = vpop.eup %2426 }
 0x248   :  { %v1068_v24 = vmul.f32 %v1056_v26, %v3000_v31  ;;  %v2429_v9 = vpop.eup %2428 }
 0x249   :  { %v1057_v43 = vadd.f32 0.5, %v1055_v30  ;;  %v1071_v61 = vmul.f32 %v2427_v32, %v1049_v25  ;;  %v2431_v10 = vpop.eup %2430  ;;  %v1064_v11 = vmul.f32 0.5, %v2429_v9 }
 0x24a   :  { %v3052_v35 = vadd.f32 %v1070_v28, %v1068_v24  ;;  %v1065_v31 = vmul.f32 0.5, %v2431_v10 }
 0x24b   :  { %v1069_v6 = vmul.f32 %v1057_v43, %v3003_v52  ;;  %v1066_v13 = vadd.f32 0.5, %v1064_v11 }
 0x24c   :  { %2432 = vtanh.f32 %v3052_v35  ;;  %v1067_v15 = vadd.f32 0.5, %v1065_v31 }
 0x24d   :  { %v3056_v8 = vadd.f32 %v1071_v61, %v1069_v6 }
 0x24f   :  { %2434 = vtanh.f32 %v3056_v8 }
 0x256   :  { %v2433_v12 = vpop.eup %2432 }
 0x257   :  { %v1076_v19 = vmul.f32 %v2433_v12, %v1066_v13 }
 0x259   :  { %v2435_v17 = vpop.eup %2434 }
 0x25a   :  { %v1077_v20 = vmul.f32 %v2435_v17, %v1067_v15 }
 0x25c   :  { %v1078_v21 = vpack.c.bf16 %v1077_v20, %v1076_v19 }
 0x25e   :  { %2155 = vst [vmem:[%s3498_s4 + $0x8] sm:$0xff] %v1078_v21   ;;  %1131 = vmatmul.mubr.bf16.vlgmr.msra.gmra.mrb[8].mxu0 %v1078_v21  ;;  %1174 = vmatmul.mubr.bf16.vlgmr.msra.gmra.mrb[8].mxu1 %v1078_v21 }
 0x25f   :  { %1249 = vmatpush1.bf16.msra.mxu0 %v2729_v36  ;;  %1292 = vmatpush1.bf16.msra.mxu1 %v2741_v38 }
 0x260   :  { %1250 = vmatprep.subr.bf16.mxu0 %v2736_v37  ;;  %1293 = vmatprep.subr.bf16.mxu1 %v2746_v39 }
 0x261   :  { %1280 = vmatprep.mubr.bf16.mxu0 %v2588_v1  ;;  %1323 = vmatprep.mubr.bf16.mxu1 %v2588_v1 }
 0x263   :  { %1251 = vmatpush1.bf16.msra.mxu0 %v2753_v40  ;;  %1294 = vmatpush1.bf16.msra.mxu1 %v2766_v42 }
 0x264   :  { %1252 = vmatprep.subr.bf16.mxu0 %v2760_v41  ;;  %1295 = vmatprep.subr.bf16.mxu1 %v2782_v45 }
 0x267   :  { %1253 = vmatpush1.bf16.msra.mxu0 %v2777_v44  ;;  %1296 = vmatpush1.bf16.msra.mxu1 %v2793_v47 }
 0x268   :  { %1254 = vmatprep.subr.bf16.mxu0 %v2787_v46  ;;  %1297 = vmatprep.subr.bf16.mxu1 %v2798_v48 }
 0x26b   :  { %1255 = vmatpush1.bf16.msra.mxu0 %v2807_v49  ;;  %1298 = vmatpush1.bf16.msra.mxu1 %v2819_v51 }
 0x26c   :  { %1256 = vmatprep.subr.bf16.mxu0 %v2812_v50  ;;  %1299 = vmatprep.subr.bf16.mxu1 %v2834_v54 }
 0x26f   :  { %1257 = vmatpush1.bf16.msra.mxu0 %v2828_v53  ;;  %1300 = vmatpush1.bf16.msra.mxu1 %v2846_v56 }
 0x270   :  { %1258 = vmatprep.subr.bf16.mxu0 %v2841_v55  ;;  %1301 = vmatprep.subr.bf16.mxu1 %v2851_v57 }
 0x273   :  { %1259 = vmatpush1.bf16.msra.mxu0 %v2860_v58  ;;  %1302 = vmatpush1.bf16.msra.mxu1 %v2872_v60 }
 0x274   :  { %1260 = vmatprep.subr.bf16.mxu0 %v2867_v59  ;;  %1303 = vmatprep.subr.bf16.mxu1 %v2887_v63 }
 0x277   :  { %1261 = vmatpush1.bf16.msra.mxu0 %v2882_v62  ;;  %1304 = vmatpush1.bf16.msra.mxu1 %v2899_v2 }
 0x278   :  { %1262 = vmatprep.subr.bf16.mxu0 %v2894_v0  ;;  %1305 = vmatprep.subr.bf16.mxu1 %v2904_v3 }
 0x27b   :  { %1263 = vmatpush1.bf16.msra.mxu0 %v2913_v4  ;;  %1306 = vmatpush1.bf16.msra.mxu1 %v2920_v5 }
 0x27c   :  { %1398 = vmatprep.subr.bf16.mxu0 %v2716_v33  ;;  %1441 = vmatprep.subr.bf16.mxu1 %v2721_v34 }
 0x331   :  { %v1132_v52 = vpop.f32.mrb[8].mxu0  ;;  %v1175_v14 = vpop.f32.mrb[8].mxu1 }
 0x332   :  { %v2170_v23 = vadd.f32 %v1132_v52, %v2984_v16  ;;  %v1134_v26 = vpop.f32.mrb[9].mxu0  ;;  %v1177_v27 = vpop.f32.mrb[9].mxu1  ;;  %v2202_v9 = vadd.f32 %v1175_v14, %v2989_v22 }
 0x333   :  { %v2171_v29 = vadd.f32 %v1134_v26, %v2986_v18  ;;  %v1136_v28 = vpop.f32.mrb[10].mxu0  ;;  %v1179_v24 = vpop.f32.mrb[10].mxu1  ;;  %v2203_v12 = vadd.f32 %v1177_v27, %v2995_v7 }
 0x334   :  { %v1192_v25 = vmul.f32 0.5, %v2170_v23  ;;  %v2172_v30 = vadd.f32 %v1136_v28, %v2984_v16  ;;  %v1138_v32 = vpop.f32.mrb[11].mxu0  ;;  %v1181_v43 = vpop.f32.mrb[11].mxu1  ;;  %v2204_v31 = vadd.f32 %v1179_v24, %v2989_v22 }
 0x335   :  { %v1200_v61 = vmul.f32 0.5, %v2171_v29  ;;  %v2173_v6 = vadd.f32 %v1138_v32, %v2986_v18  ;;  %v2205_v13 = vadd.f32 %v1181_v43, %v2995_v7  ;;  %v1210_v20 = vmul.f32 0.5, %v2203_v12 }
 0x336   :  { %2436 = vtanh.f32 %v1192_v25  ;;  %v1193_v10 = vmul.f32 0.5, %v2172_v30 }
 0x337   :  { %2438 = vtanh.f32 %v1200_v61  ;;  %v1201_v11 = vmul.f32 0.5, %v2173_v6  ;;  %v1211_v52 = vmul.f32 0.5, %v2205_v13 }
 0x338   :  { %2440 = vtanh.f32 %v1193_v10 }
 0x339   :  { %2442 = vtanh.f32 %v2202_v9 }
 0x33a   :  { %2444 = vtanh.f32 %v1201_v11 }
 0x33b   :  { %2446 = vtanh.f32 %v2204_v31 }
 0x33c   :  { %2448 = vtanh.f32 %v1210_v20 }
 0x33d   :  { %2450 = vtanh.f32 %v1211_v52 }
 0x340   :  { %v2437_v15 = vpop.eup %2436 }
 0x341   :  { %v2439_v17 = vpop.eup %2438  ;;  %v1196_v19 = vmul.f32 0.5, %v2437_v15 }
 0x342   :  { %v1204_v21 = vmul.f32 0.5, %v2439_v17  ;;  %v2441_v14 = vpop.eup %2440 }
 0x343   :  { %v1198_v23 = vadd.f32 0.5, %v1196_v19  ;;  %v2443_v26 = vpop.eup %2442  ;;  %v1197_v28 = vmul.f32 0.5, %v2441_v14 }
 0x344   :  { %v1206_v29 = vadd.f32 0.5, %v1204_v21  ;;  %v2445_v25 = vpop.eup %2444 }
 0x345   :  { %v1220_v24 = vmul.f32 %v2443_v26, %v1198_v23  ;;  %v1199_v27 = vadd.f32 0.5, %v1197_v28  ;;  %v1205_v32 = vmul.f32 0.5, %v2445_v25  ;;  %v2447_v43 = vpop.eup %2446 }
 0x346   :  { %v1218_v30 = vmul.f32 %v1206_v29, %v3052_v35  ;;  %v2449_v31 = vpop.eup %2448 }
 0x347   :  { %v1207_v6 = vadd.f32 0.5, %v1205_v32  ;;  %v1221_v9 = vmul.f32 %v2447_v43, %v1199_v27  ;;  %v2451_v12 = vpop.eup %2450  ;;  %v1214_v13 = vmul.f32 0.5, %v2449_v31 }
 0x348   :  { %v3105_v61 = vadd.f32 %v1220_v24, %v1218_v30  ;;  %v1215_v35 = vmul.f32 0.5, %v2451_v12 }
 0x349   :  { %v1219_v10 = vmul.f32 %v1207_v6, %v3056_v8  ;;  %v1216_v17 = vadd.f32 0.5, %v1214_v13 }
 0x34a   :  { %2452 = vtanh.f32 %v3105_v61  ;;  %v1217_v19 = vadd.f32 0.5, %v1215_v35 }
 0x34b   :  { %v3109_v11 = vadd.f32 %v1221_v9, %v1219_v10 }
 0x34d   :  { %2454 = vtanh.f32 %v3109_v11 }
 0x354   :  { %v2453_v15 = vpop.eup %2452 }
 0x355   :  { %v1226_v21 = vmul.f32 %v2453_v15, %v1216_v17 }
 0x357   :  { %v2455_v20 = vpop.eup %2454 }
 0x358   :  { %v1227_v52 = vmul.f32 %v2455_v20, %v1217_v19 }
 0x35a   :  { %v1228_v14 = vpack.c.bf16 %v1227_v52, %v1226_v21 }
 0x35c   :  { %2156 = vst [vmem:[%s3498_s4 + $0x10] sm:$0xff] %v1228_v14   ;;  %1281 = vmatmul.mubr.bf16.vlgmr.msra.gmra.mrb[12].mxu0 %v1228_v14  ;;  %1324 = vmatmul.mubr.bf16.vlgmr.msra.gmra.mrb[12].mxu1 %v1228_v14 }
 0x35d   :  { %1399 = vmatpush1.bf16.msra.mxu0 %v2729_v36  ;;  %1442 = vmatpush1.bf16.msra.mxu1 %v2741_v38 }
 0x35e   :  { %1400 = vmatprep.subr.bf16.mxu0 %v2736_v37  ;;  %1443 = vmatprep.subr.bf16.mxu1 %v2746_v39 }
 0x35f   :  { %1430 = vmatprep.mubr.bf16.mxu0 %v2588_v1  ;;  %1473 = vmatprep.mubr.bf16.mxu1 %v2588_v1 }
 0x361   :  { %1401 = vmatpush1.bf16.msra.mxu0 %v2753_v40  ;;  %1444 = vmatpush1.bf16.msra.mxu1 %v2766_v42 }
 0x362   :  { %1402 = vmatprep.subr.bf16.mxu0 %v2760_v41  ;;  %1445 = vmatprep.subr.bf16.mxu1 %v2782_v45 }
 0x365   :  { %1403 = vmatpush1.bf16.msra.mxu0 %v2777_v44  ;;  %1446 = vmatpush1.bf16.msra.mxu1 %v2793_v47 }
 0x366   :  { %1404 = vmatprep.subr.bf16.mxu0 %v2787_v46  ;;  %1447 = vmatprep.subr.bf16.mxu1 %v2798_v48 }
 0x369   :  { %1405 = vmatpush1.bf16.msra.mxu0 %v2807_v49  ;;  %1448 = vmatpush1.bf16.msra.mxu1 %v2819_v51 }
 0x36a   :  { %1406 = vmatprep.subr.bf16.mxu0 %v2812_v50  ;;  %1449 = vmatprep.subr.bf16.mxu1 %v2834_v54 }
 0x36d   :  { %1407 = vmatpush1.bf16.msra.mxu0 %v2828_v53  ;;  %1450 = vmatpush1.bf16.msra.mxu1 %v2846_v56 }
 0x36e   :  { %1408 = vmatprep.subr.bf16.mxu0 %v2841_v55  ;;  %1451 = vmatprep.subr.bf16.mxu1 %v2851_v57 }
 0x371   :  { %1409 = vmatpush1.bf16.msra.mxu0 %v2860_v58  ;;  %1452 = vmatpush1.bf16.msra.mxu1 %v2872_v60 }
 0x372   :  { %1410 = vmatprep.subr.bf16.mxu0 %v2867_v59  ;;  %1453 = vmatprep.subr.bf16.mxu1 %v2887_v63 }
 0x375   :  { %1411 = vmatpush1.bf16.msra.mxu0 %v2882_v62  ;;  %1454 = vmatpush1.bf16.msra.mxu1 %v2899_v2 }
 0x376   :  { %1412 = vmatprep.subr.bf16.mxu0 %v2894_v0  ;;  %1455 = vmatprep.subr.bf16.mxu1 %v2904_v3 }
 0x379   :  { %1413 = vmatpush1.bf16.msra.mxu0 %v2913_v4  ;;  %1456 = vmatpush1.bf16.msra.mxu1 %v2920_v5 }
 0x37a   :  { %1548 = vmatprep.subr.bf16.mxu0 %v2716_v33  ;;  %1591 = vmatprep.subr.bf16.mxu1 %v2721_v34 }
 0x42f   :  { %v1282_v36 = vpop.f32.mrb[12].mxu0  ;;  %v1325_v37 = vpop.f32.mrb[12].mxu1 }
 0x430   :  { %v2174_v38 = vadd.f32 %v1282_v36, %v2984_v16  ;;  %v1284_v39 = vpop.f32.mrb[13].mxu0  ;;  %v1327_v40 = vpop.f32.mrb[13].mxu1  ;;  %v2206_v34 = vadd.f32 %v1325_v37, %v2989_v22 }
 0x431   :  { %v2175_v41 = vadd.f32 %v1284_v39, %v2986_v18  ;;  %v1286_v42 = vpop.f32.mrb[14].mxu0  ;;  %v1329_v44 = vpop.f32.mrb[14].mxu1  ;;  %v2207_v28 = vadd.f32 %v1327_v40, %v2995_v7 }
 0x432   :  { %v1342_v45 = vmul.f32 0.5, %v2174_v38  ;;  %v2176_v46 = vadd.f32 %v1286_v42, %v2984_v16  ;;  %v1288_v47 = vpop.f32.mrb[15].mxu0  ;;  %v1331_v48 = vpop.f32.mrb[15].mxu1  ;;  %v2208_v29 = vadd.f32 %v1329_v44, %v2989_v22 }
 0x433   :  { %v1350_v8 = vmul.f32 0.5, %v2175_v41  ;;  %v2177_v33 = vadd.f32 %v1288_v47, %v2986_v18  ;;  %v2209_v25 = vadd.f32 %v1331_v48, %v2995_v7  ;;  %v1360_v32 = vmul.f32 0.5, %v2207_v28  ;;  %v3209_v28 = vld [vmem:[%s3496_s2 + $0x44] ss:$16 sps:$4 sm:$0xff]  }
 0x434   :  { %2456 = vtanh.f32 %v1342_v45  ;;  %v1343_v23 = vmul.f32 0.5, %v2176_v46 }
 0x435   :  { %2458 = vtanh.f32 %v1350_v8  ;;  %v1351_v26 = vmul.f32 0.5, %v2177_v33  ;;  %v1361_v6 = vmul.f32 0.5, %v2209_v25  ;;  %v3177_v33 = vld [vmem:[%s3496_s2 + $0x8] ss:$16 sps:$4 sm:$0xff]   ;;  %v3215_v25 = vld [vmem:[%s3496_s2 + $0x4c] ss:$16 sps:$4 sm:$0xff]  }
 0x436   :  { %2460 = vtanh.f32 %v1343_v23  ;;  %v3189_v23 = vld [vmem:[%s3496_s2 + $0x2c] ss:$16 sps:$4 sm:$0xff]  }
 0x437   :  { %2462 = vtanh.f32 %v2206_v34  ;;  %v3183_v34 = vld [vmem:[%s3496_s2 + $0x24] ss:$16 sps:$4 sm:$0xff]  }
 0x438   :  { %2464 = vtanh.f32 %v1351_v26  ;;  %v3197_v26 = vld [vmem:[%s3496_s2 + $0x20] ss:$16 sps:$4 sm:$0xff]  }
 0x439   :  { %2466 = vtanh.f32 %v2208_v29  ;;  %v3203_v29 = vld [vmem:[%s3496_s2 + $0x28] ss:$16 sps:$4 sm:$0xff]  }
 0x43a   :  { %2468 = vtanh.f32 %v1360_v32  ;;  %v3239_v32 = vld [vmem:[%s3496_s2 + $0x6c] ss:$16 sps:$4 sm:$0xff]  }
 0x43b   :  { %2470 = vtanh.f32 %v1361_v6 }
 0x43e   :  { %v2457_v24 = vpop.eup %2456 }
 0x43f   :  { %v2459_v30 = vpop.eup %2458  ;;  %v1346_v27 = vmul.f32 0.5, %v2457_v24  ;;  %v3221_v24 = vld [vmem:[%s3496_s2 + $0x40] ss:$16 sps:$4 sm:$0xff]  }
 0x440   :  { %v1354_v43 = vmul.f32 0.5, %v2459_v30  ;;  %v2461_v9 = vpop.eup %2460  ;;  %v3227_v30 = vld [vmem:[%s3496_s2 + $0x48] ss:$16 sps:$4 sm:$0xff]  }
 0x441   :  { %v1348_v10 = vadd.f32 0.5, %v1346_v27  ;;  %v2463_v31 = vpop.eup %2462  ;;  %v1347_v13 = vmul.f32 0.5, %v2461_v9  ;;  %v3233_v27 = vld [vmem:[%s3496_s2 + $0x64] ss:$16 sps:$4 sm:$0xff]  }
 0x442   :  { %v1356_v12 = vadd.f32 0.5, %v1354_v43  ;;  %v2465_v35 = vpop.eup %2464 }
 0x443   :  { %v1370_v15 = vmul.f32 %v2463_v31, %v1348_v10  ;;  %v1349_v19 = vadd.f32 0.5, %v1347_v13  ;;  %v1355_v20 = vmul.f32 0.5, %v2465_v35  ;;  %v2467_v21 = vpop.eup %2466 }
 0x444   :  { %v1368_v17 = vmul.f32 %v1356_v12, %v3105_v61  ;;  %v2469_v39 = vpop.eup %2468 }
 0x445   :  { %v1357_v14 = vadd.f32 0.5, %v1355_v20  ;;  %v1371_v36 = vmul.f32 %v2467_v21, %v1349_v19  ;;  %v2471_v40 = vpop.eup %2470  ;;  %v1364_v41 = vmul.f32 0.5, %v2469_v39 }
 0x446   :  { %v3158_v52 = vadd.f32 %v1370_v15, %v1368_v17  ;;  %v1365_v61 = vmul.f32 0.5, %v2471_v40 }
 0x447   :  { %v1369_v37 = vmul.f32 %v1357_v14, %v3109_v11  ;;  %v1366_v44 = vadd.f32 0.5, %v1364_v41  ;;  %v3171_v11 = vld [vmem:[%s3496_s2] ss:$16 sps:$4 sm:$0xff]  }
 0x448   :  { %2472 = vtanh.f32 %v3158_v52  ;;  %v1367_v45 = vadd.f32 0.5, %v1365_v61 }
 0x449   :  { %v3162_v38 = vadd.f32 %v1371_v36, %v1369_v37 }
 0x44b   :  { %2474 = vtanh.f32 %v3162_v38 }
 0x452   :  { %v2473_v42 = vpop.eup %2472 }
 0x453   :  { %v1376_v47 = vmul.f32 %v2473_v42, %v1366_v44 }
 0x455   :  { %v2475_v46 = vpop.eup %2474 }
 0x456   :  { %v1377_v48 = vmul.f32 %v2475_v46, %v1367_v45 }
 0x458   :  { %v1378_v8 = vpack.c.bf16 %v1377_v48, %v1376_v47 }
 0x45a   :  { %2157 = vst [vmem:[%s3498_s4 + $0x18] sm:$0xff] %v1378_v8   ;;  %1431 = vmatmul.mubr.bf16.vlgmr.msra.gmra.mrb[16].mxu0 %v1378_v8  ;;  %1474 = vmatmul.mubr.bf16.vlgmr.msra.gmra.mrb[16].mxu1 %v1378_v8 }
 0x45b   :  { %1549 = vmatpush1.bf16.msra.mxu0 %v3171_v11  ;;  %1592 = vmatpush1.bf16.msra.mxu1 %v3177_v33 }
 0x45c   :  { %1550 = vmatprep.subr.bf16.mxu0 %v3183_v34  ;;  %1593 = vmatprep.subr.bf16.mxu1 %v3189_v23 }
 0x45d   :  { %1580 = vmatprep.mubr.bf16.mxu0 %v2588_v1  ;;  %1623 = vmatprep.mubr.bf16.mxu1 %v2588_v1 }
 0x45f   :  { %1551 = vmatpush1.bf16.msra.mxu0 %v3197_v26  ;;  %1594 = vmatpush1.bf16.msra.mxu1 %v3203_v29 }
 0x460   :  { %1552 = vmatprep.subr.bf16.mxu0 %v3209_v28  ;;  %1595 = vmatprep.subr.bf16.mxu1 %v3215_v25 }
 0x463   :  { %1553 = vmatpush1.bf16.msra.mxu0 %v3221_v24  ;;  %1596 = vmatpush1.bf16.msra.mxu1 %v3227_v30 }
 0x464   :  { %1554 = vmatprep.subr.bf16.mxu0 %v3233_v27  ;;  %1597 = vmatprep.subr.bf16.mxu1 %v3239_v32 }
 0x467   :  { %1555 = vmatpush1.bf16.msra.mxu0 %v2807_v49  ;;  %1598 = vmatpush1.bf16.msra.mxu1 %v2819_v51  ;;  %v3263_v49 = vld [vmem:[%s3496_s2 + $0x4] ss:$16 sps:$4 sm:$0xff]  }
 0x468   :  { %1556 = vmatprep.subr.bf16.mxu0 %v2812_v50  ;;  %1599 = vmatprep.subr.bf16.mxu1 %v2834_v54  ;;  %v3269_v50 = vld [vmem:[%s3496_s2 + $0xc] ss:$16 sps:$4 sm:$0xff]  }
 0x46b   :  { %1557 = vmatpush1.bf16.msra.mxu0 %v2828_v53  ;;  %1600 = vmatpush1.bf16.msra.mxu1 %v2846_v56 }
 0x46c   :  { %1558 = vmatprep.subr.bf16.mxu0 %v2841_v55  ;;  %1601 = vmatprep.subr.bf16.mxu1 %v2851_v57 }
 0x46f   :  { %1559 = vmatpush1.bf16.msra.mxu0 %v2860_v58  ;;  %1602 = vmatpush1.bf16.msra.mxu1 %v2872_v60 }
 0x470   :  { %1560 = vmatprep.subr.bf16.mxu0 %v2867_v59  ;;  %1603 = vmatprep.subr.bf16.mxu1 %v2887_v63 }
 0x473   :  { %1561 = vmatpush1.bf16.msra.mxu0 %v2882_v62  ;;  %1604 = vmatpush1.bf16.msra.mxu1 %v2899_v2 }
 0x474   :  { %1562 = vmatprep.subr.bf16.mxu0 %v2894_v0  ;;  %1605 = vmatprep.subr.bf16.mxu1 %v2904_v3 }
 0x477   :  { %1563 = vmatpush1.bf16.msra.mxu0 %v2913_v4  ;;  %1606 = vmatpush1.bf16.msra.mxu1 %v2920_v5 }
 0x478   :  { %1698 = vmatprep.subr.bf16.mxu0 %v3263_v49  ;;  %1741 = vmatprep.subr.bf16.mxu1 %v3269_v50 }
 0x52d   :  { %v1432_v51 = vpop.f32.mrb[16].mxu0  ;;  %v1475_v53 = vpop.f32.mrb[16].mxu1 }
 0x52e   :  { %v2178_v54 = vadd.f32 %v1432_v51, %v2984_v16  ;;  %v1434_v55 = vpop.f32.mrb[17].mxu0  ;;  %v1477_v56 = vpop.f32.mrb[17].mxu1  ;;  %v2210_v4 = vadd.f32 %v1475_v53, %v2989_v22 }
 0x52f   :  { %v2179_v57 = vadd.f32 %v1434_v55, %v2986_v18  ;;  %v1436_v58 = vpop.f32.mrb[18].mxu0  ;;  %v1479_v59 = vpop.f32.mrb[18].mxu1  ;;  %v2211_v9 = vadd.f32 %v1477_v56, %v2995_v7 }
 0x530   :  { %v1492_v60 = vmul.f32 0.5, %v2178_v54  ;;  %v2180_v62 = vadd.f32 %v1436_v58, %v2984_v16  ;;  %v1438_v63 = vpop.f32.mrb[19].mxu0  ;;  %v1481_v0 = vpop.f32.mrb[19].mxu1  ;;  %v2212_v6 = vadd.f32 %v1479_v59, %v2989_v22 }
 0x531   :  { %v1500_v2 = vmul.f32 0.5, %v2179_v57  ;;  %v2181_v3 = vadd.f32 %v1438_v63, %v2986_v18  ;;  %v2213_v10 = vadd.f32 %v1481_v0, %v2995_v7  ;;  %v1510_v35 = vmul.f32 0.5, %v2211_v9  ;;  %v3320_v63 = vld [vmem:[%s3496_s2 + $0x84] ss:$16 sps:$4 sm:$0xff]   ;;  %v3326_v0 = vld [vmem:[%s3496_s2 + $0x8c] ss:$16 sps:$4 sm:$0xff]  }
 0x532   :  { %2476 = vtanh.f32 %v1492_v60  ;;  %v1493_v5 = vmul.f32 0.5, %v2180_v62  ;;  %v3314_v62 = vld [vmem:[%s3496_s2 + $0x68] ss:$16 sps:$4 sm:$0xff]   ;;  %v3368_v9 = vld [vmem:[%s3496_s2 + $0xc4] ss:$16 sps:$4 sm:$0xff]  }
 0x533   :  { %2478 = vtanh.f32 %v1500_v2  ;;  %v1501_v43 = vmul.f32 0.5, %v2181_v3  ;;  %v1511_v17 = vmul.f32 0.5, %v2213_v10  ;;  %v3332_v2 = vld [vmem:[%s3496_s2 + $0x80] ss:$16 sps:$4 sm:$0xff]   ;;  %v3338_v3 = vld [vmem:[%s3496_s2 + $0x88] ss:$16 sps:$4 sm:$0xff]  }
 0x534   :  { %2480 = vtanh.f32 %v1493_v5  ;;  %v3350_v5 = vld [vmem:[%s3496_s2 + $0xac] ss:$16 sps:$4 sm:$0xff]  }
 0x535   :  { %2482 = vtanh.f32 %v2210_v4  ;;  %v3344_v4 = vld [vmem:[%s3496_s2 + $0xa4] ss:$16 sps:$4 sm:$0xff]   ;;  %v3374_v10 = vld [vmem:[%s3496_s2 + $0xcc] ss:$16 sps:$4 sm:$0xff]  }
 0x536   :  { %2484 = vtanh.f32 %v1501_v43  ;;  %v3356_v43 = vld [vmem:[%s3496_s2 + $0xa0] ss:$16 sps:$4 sm:$0xff]  }
 0x537   :  { %2486 = vtanh.f32 %v2212_v6  ;;  %v3362_v6 = vld [vmem:[%s3496_s2 + $0xa8] ss:$16 sps:$4 sm:$0xff]  }
 0x538   :  { %2488 = vtanh.f32 %v1510_v35  ;;  %v3398_v35 = vld [vmem:[%s3496_s2 + $0xec] ss:$16 sps:$4 sm:$0xff]  }
 0x539   :  { %2490 = vtanh.f32 %v1511_v17  ;;  %v3410_v17 = vld [vmem:[%s3496_s2 + $0xe8] ss:$16 sps:$4 sm:$0xff]  }
 0x53c   :  { %v2477_v31 = vpop.eup %2476 }
 0x53d   :  { %v2479_v12 = vpop.eup %2478  ;;  %v1496_v13 = vmul.f32 0.5, %v2477_v31  ;;  %v3380_v31 = vld [vmem:[%s3496_s2 + $0xc0] ss:$16 sps:$4 sm:$0xff]  }
 0x53e   :  { %v1504_v15 = vmul.f32 0.5, %v2479_v12  ;;  %v2481_v19 = vpop.eup %2480  ;;  %v3386_v12 = vld [vmem:[%s3496_s2 + $0xc8] ss:$16 sps:$4 sm:$0xff]  }
 0x53f   :  { %v1498_v20 = vadd.f32 0.5, %v1496_v13  ;;  %v2483_v21 = vpop.eup %2482  ;;  %v1497_v36 = vmul.f32 0.5, %v2481_v19  ;;  %v3392_v13 = vld [vmem:[%s3496_s2 + $0xe4] ss:$16 sps:$4 sm:$0xff]  }
 0x540   :  { %v1506_v14 = vadd.f32 0.5, %v1504_v15  ;;  %v2485_v37 = vpop.eup %2484  ;;  %v3404_v15 = vld [vmem:[%s3496_s2 + $0xe0] ss:$16 sps:$4 sm:$0xff]  }
 0x541   :  { %v1520_v39 = vmul.f32 %v2483_v21, %v1498_v20  ;;  %v1499_v41 = vadd.f32 0.5, %v1497_v36  ;;  %v1505_v61 = vmul.f32 0.5, %v2485_v37  ;;  %v2487_v42 = vpop.eup %2486 }
 0x542   :  { %v1518_v40 = vmul.f32 %v1506_v14, %v3158_v52  ;;  %v2489_v8 = vpop.eup %2488 }
 0x543   :  { %v1507_v45 = vadd.f32 0.5, %v1505_v61  ;;  %v1521_v46 = vmul.f32 %v2487_v42, %v1499_v41  ;;  %v2491_v51 = vpop.eup %2490  ;;  %v1514_v53 = vmul.f32 0.5, %v2489_v8 }
 0x544   :  { %v3281_v44 = vadd.f32 %v1520_v39, %v1518_v40  ;;  %v1515_v52 = vmul.f32 0.5, %v2491_v51 }
 0x545   :  { %v1519_v47 = vmul.f32 %v1507_v45, %v3162_v38  ;;  %v1516_v55 = vadd.f32 0.5, %v1514_v53  ;;  %v3308_v38 = vld [vmem:[%s3496_s2 + $0x60] ss:$16 sps:$4 sm:$0xff]  }
 0x546   :  { %2492 = vtanh.f32 %v3281_v44  ;;  %v1517_v56 = vadd.f32 0.5, %v1515_v52 }
 0x547   :  { %v3285_v48 = vadd.f32 %v1521_v46, %v1519_v47 }
 0x549   :  { %2494 = vtanh.f32 %v3285_v48 }
 0x550   :  { %v2493_v54 = vpop.eup %2492 }
 0x551   :  { %v1526_v58 = vmul.f32 %v2493_v54, %v1516_v55 }
 0x553   :  { %v2495_v57 = vpop.eup %2494 }
 0x554   :  { %v1527_v59 = vmul.f32 %v2495_v57, %v1517_v56 }
 0x556   :  { %v1528_v60 = vpack.c.bf16 %v1527_v59, %v1526_v58 }
 0x558   :  { %2158 = vst [vmem:[%s3498_s4 + $0x20] sm:$0xff] %v1528_v60   ;;  %1581 = vmatmul.mubr.bf16.vlgmr.msra.gmra.mrb[20].mxu0 %v1528_v60  ;;  %1624 = vmatmul.mubr.bf16.vlgmr.msra.gmra.mrb[20].mxu1 %v1528_v60 }
 0x559   :  { %1699 = vmatpush1.bf16.msra.mxu0 %v3171_v11  ;;  %1742 = vmatpush1.bf16.msra.mxu1 %v3177_v33 }
 0x55a   :  { %1700 = vmatprep.subr.bf16.mxu0 %v3183_v34  ;;  %1743 = vmatprep.subr.bf16.mxu1 %v3189_v23 }
 0x55b   :  { %1730 = vmatprep.mubr.bf16.mxu0 %v2588_v1  ;;  %1773 = vmatprep.mubr.bf16.mxu1 %v2588_v1 }
 0x55d   :  { %1701 = vmatpush1.bf16.msra.mxu0 %v3197_v26  ;;  %1744 = vmatpush1.bf16.msra.mxu1 %v3203_v29 }
 0x55e   :  { %1702 = vmatprep.subr.bf16.mxu0 %v3209_v28  ;;  %1745 = vmatprep.subr.bf16.mxu1 %v3215_v25 }
 0x561   :  { %1703 = vmatpush1.bf16.msra.mxu0 %v3221_v24  ;;  %1746 = vmatpush1.bf16.msra.mxu1 %v3227_v30 }
 0x562   :  { %1704 = vmatprep.subr.bf16.mxu0 %v3233_v27  ;;  %1747 = vmatprep.subr.bf16.mxu1 %v3239_v32 }
 0x565   :  { %1705 = vmatpush1.bf16.msra.mxu0 %v3308_v38  ;;  %1748 = vmatpush1.bf16.msra.mxu1 %v3314_v62 }
 0x566   :  { %1706 = vmatprep.subr.bf16.mxu0 %v3320_v63  ;;  %1749 = vmatprep.subr.bf16.mxu1 %v3326_v0 }
 0x569   :  { %1707 = vmatpush1.bf16.msra.mxu0 %v3332_v2  ;;  %1750 = vmatpush1.bf16.msra.mxu1 %v3338_v3 }
 0x56a   :  { %1708 = vmatprep.subr.bf16.mxu0 %v3344_v4  ;;  %1751 = vmatprep.subr.bf16.mxu1 %v3350_v5 }
 0x56d   :  { %1709 = vmatpush1.bf16.msra.mxu0 %v3356_v43  ;;  %1752 = vmatpush1.bf16.msra.mxu1 %v3362_v6 }
 0x56e   :  { %1710 = vmatprep.subr.bf16.mxu0 %v3368_v9  ;;  %1753 = vmatprep.subr.bf16.mxu1 %v3374_v10 }
 0x571   :  { %1711 = vmatpush1.bf16.msra.mxu0 %v3380_v31  ;;  %1754 = vmatpush1.bf16.msra.mxu1 %v3386_v12 }
 0x572   :  { %1712 = vmatprep.subr.bf16.mxu0 %v3392_v13  ;;  %1755 = vmatprep.subr.bf16.mxu1 %v3398_v35 }
 0x575   :  { %1713 = vmatpush1.bf16.msra.mxu0 %v3404_v15  ;;  %1756 = vmatpush1.bf16.msra.mxu1 %v3410_v17 }
 0x576   :  { %1848 = vmatprep.subr.bf16.mxu0 %v3263_v49  ;;  %1891 = vmatprep.subr.bf16.mxu1 %v3269_v50 }
 0x62b   :  { %v1582_v19 = vpop.f32.mrb[20].mxu0  ;;  %v1625_v20 = vpop.f32.mrb[20].mxu1 }
 0x62c   :  { %v2182_v21 = vadd.f32 %v1582_v19, %v2984_v16  ;;  %v1584_v14 = vpop.f32.mrb[21].mxu0  ;;  %v1627_v36 = vpop.f32.mrb[21].mxu1  ;;  %v2214_v50 = vadd.f32 %v1625_v20, %v2989_v22 }
 0x62d   :  { %v2183_v37 = vadd.f32 %v1584_v14, %v2986_v18  ;;  %v1586_v39 = vpop.f32.mrb[22].mxu0  ;;  %v1629_v40 = vpop.f32.mrb[22].mxu1  ;;  %v2215_v53 = vadd.f32 %v1627_v36, %v2995_v7 }
 0x62e   :  { %v1642_v41 = vmul.f32 0.5, %v2182_v21  ;;  %v2184_v61 = vadd.f32 %v1586_v39, %v2984_v16  ;;  %v1588_v42 = vpop.f32.mrb[23].mxu0  ;;  %v1631_v45 = vpop.f32.mrb[23].mxu1  ;;  %v2216_v51 = vadd.f32 %v1629_v40, %v2989_v22 }
 0x62f   :  { %v1650_v46 = vmul.f32 0.5, %v2183_v37  ;;  %v2185_v49 = vadd.f32 %v1588_v42, %v2986_v18  ;;  %v2217_v52 = vadd.f32 %v1631_v45, %v2995_v7  ;;  %v1660_v57 = vmul.f32 0.5, %v2215_v53 }
 0x630   :  { %2496 = vtanh.f32 %v1642_v41  ;;  %v1643_v47 = vmul.f32 0.5, %v2184_v61 }
 0x631   :  { %2498 = vtanh.f32 %v1650_v46  ;;  %v1651_v8 = vmul.f32 0.5, %v2185_v49  ;;  %v1661_v59 = vmul.f32 0.5, %v2217_v52 }
 0x632   :  { %2500 = vtanh.f32 %v1643_v47 }
 0x633   :  { %2502 = vtanh.f32 %v2214_v50 }
 0x634   :  { %2504 = vtanh.f32 %v1651_v8 }
 0x635   :  { %2506 = vtanh.f32 %v2216_v51 }
 0x636   :  { %2508 = vtanh.f32 %v1660_v57 }
 0x637   :  { %2510 = vtanh.f32 %v1661_v59 }
 0x63a   :  { %v2497_v54 = vpop.eup %2496 }
 0x63b   :  { %v2499_v55 = vpop.eup %2498  ;;  %v1646_v56 = vmul.f32 0.5, %v2497_v54 }
 0x63c   :  { %v1654_v58 = vmul.f32 0.5, %v2499_v55  ;;  %v2501_v60 = vpop.eup %2500 }
 0x63d   :  { %v1648_v19 = vadd.f32 0.5, %v1646_v56  ;;  %v2503_v20 = vpop.eup %2502  ;;  %v1647_v14 = vmul.f32 0.5, %v2501_v60 }
 0x63e   :  { %v1656_v21 = vadd.f32 0.5, %v1654_v58  ;;  %v2505_v37 = vpop.eup %2504 }
 0x63f   :  { %v1670_v39 = vmul.f32 %v2503_v20, %v1648_v19  ;;  %v1649_v36 = vadd.f32 0.5, %v1647_v14  ;;  %v1655_v41 = vmul.f32 0.5, %v2505_v37  ;;  %v2507_v61 = vpop.eup %2506 }
 0x640   :  { %v1668_v40 = vmul.f32 %v1656_v21, %v3281_v44  ;;  %v2509_v47 = vpop.eup %2508 }
 0x641   :  { %v1657_v45 = vadd.f32 0.5, %v1655_v41  ;;  %v1671_v46 = vmul.f32 %v2507_v61, %v1649_v36  ;;  %v2511_v8 = vpop.eup %2510  ;;  %v1664_v51 = vmul.f32 0.5, %v2509_v47 }
 0x642   :  { %v3424_v42 = vadd.f32 %v1670_v39, %v1668_v40  ;;  %v1665_v44 = vmul.f32 0.5, %v2511_v8 }
 0x643   :  { %v1669_v49 = vmul.f32 %v1657_v45, %v3285_v48  ;;  %v1666_v52 = vadd.f32 0.5, %v1664_v51 }
 0x644   :  { %2512 = vtanh.f32 %v3424_v42  ;;  %v1667_v54 = vadd.f32 0.5, %v1665_v44 }
 0x645   :  { %v3428_v50 = vadd.f32 %v1671_v46, %v1669_v49 }
 0x647   :  { %2514 = vtanh.f32 %v3428_v50 }
 0x64e   :  { %v2513_v53 = vpop.eup %2512 }
 0x64f   :  { %v1676_v56 = vmul.f32 %v2513_v53, %v1666_v52 }
 0x651   :  { %v2515_v55 = vpop.eup %2514 }
 0x652   :  { %v1677_v57 = vmul.f32 %v2515_v55, %v1667_v54 }
 0x654   :  { %v1678_v58 = vpack.c.bf16 %v1677_v57, %v1676_v56 }
 0x656   :  { %2159 = vst [vmem:[%s3498_s4 + $0x28] sm:$0xff] %v1678_v58   ;;  %1731 = vmatmul.mubr.bf16.vlgmr.msra.gmra.mrb[24].mxu0 %v1678_v58  ;;  %1774 = vmatmul.mubr.bf16.vlgmr.msra.gmra.mrb[24].mxu1 %v1678_v58 }
 0x657   :  { %1849 = vmatpush1.bf16.msra.mxu0 %v3171_v11  ;;  %1892 = vmatpush1.bf16.msra.mxu1 %v3177_v33 }
 0x658   :  { %1850 = vmatprep.subr.bf16.mxu0 %v3183_v34  ;;  %1893 = vmatprep.subr.bf16.mxu1 %v3189_v23 }
 0x659   :  { %1880 = vmatprep.mubr.bf16.mxu0 %v2588_v1  ;;  %1923 = vmatprep.mubr.bf16.mxu1 %v2588_v1 }
 0x65b   :  { %1851 = vmatpush1.bf16.msra.mxu0 %v3197_v26  ;;  %1894 = vmatpush1.bf16.msra.mxu1 %v3203_v29 }
 0x65c   :  { %1852 = vmatprep.subr.bf16.mxu0 %v3209_v28  ;;  %1895 = vmatprep.subr.bf16.mxu1 %v3215_v25 }
 0x65f   :  { %1853 = vmatpush1.bf16.msra.mxu0 %v3221_v24  ;;  %1896 = vmatpush1.bf16.msra.mxu1 %v3227_v30 }
 0x660   :  { %1854 = vmatprep.subr.bf16.mxu0 %v3233_v27  ;;  %1897 = vmatprep.subr.bf16.mxu1 %v3239_v32 }
 0x663   :  { %1855 = vmatpush1.bf16.msra.mxu0 %v3308_v38  ;;  %1898 = vmatpush1.bf16.msra.mxu1 %v3314_v62 }
 0x664   :  { %1856 = vmatprep.subr.bf16.mxu0 %v3320_v63  ;;  %1899 = vmatprep.subr.bf16.mxu1 %v3326_v0 }
 0x667   :  { %1857 = vmatpush1.bf16.msra.mxu0 %v3332_v2  ;;  %1900 = vmatpush1.bf16.msra.mxu1 %v3338_v3 }
 0x668   :  { %1858 = vmatprep.subr.bf16.mxu0 %v3344_v4  ;;  %1901 = vmatprep.subr.bf16.mxu1 %v3350_v5 }
 0x66b   :  { %1859 = vmatpush1.bf16.msra.mxu0 %v3356_v43  ;;  %1902 = vmatpush1.bf16.msra.mxu1 %v3362_v6 }
 0x66c   :  { %1860 = vmatprep.subr.bf16.mxu0 %v3368_v9  ;;  %1903 = vmatprep.subr.bf16.mxu1 %v3374_v10 }
 0x66f   :  { %1861 = vmatpush1.bf16.msra.mxu0 %v3380_v31  ;;  %1904 = vmatpush1.bf16.msra.mxu1 %v3386_v12 }
 0x670   :  { %1862 = vmatprep.subr.bf16.mxu0 %v3392_v13  ;;  %1905 = vmatprep.subr.bf16.mxu1 %v3398_v35 }
 0x673   :  { %1863 = vmatpush1.bf16.msra.mxu0 %v3404_v15  ;;  %1906 = vmatpush1.bf16.msra.mxu1 %v3410_v17 }
 0x729   :  { %v1732_v1 = vpop.f32.mrb[24].mxu0  ;;  %v1775_v11 = vpop.f32.mrb[24].mxu1 }
 0x72a   :  { %v2186_v33 = vadd.f32 %v1732_v1, %v2984_v16  ;;  %v1734_v34 = vpop.f32.mrb[25].mxu0  ;;  %v1777_v23 = vpop.f32.mrb[25].mxu1  ;;  %v2218_v38 = vadd.f32 %v1775_v11, %v2989_v22 }
 0x72b   :  { %v2187_v26 = vadd.f32 %v1734_v34, %v2986_v18  ;;  %v1736_v29 = vpop.f32.mrb[26].mxu0  ;;  %v1779_v28 = vpop.f32.mrb[26].mxu1  ;;  %v2219_v2 = vadd.f32 %v1777_v23, %v2995_v7 }
 0x72c   :  { %v1792_v25 = vmul.f32 0.5, %v2186_v33  ;;  %v2188_v24 = vadd.f32 %v1736_v29, %v2984_v16  ;;  %v1738_v30 = vpop.f32.mrb[27].mxu0  ;;  %v1781_v27 = vpop.f32.mrb[27].mxu1  ;;  %v2220_v0 = vadd.f32 %v1779_v28, %v2989_v22 }
 0x72d   :  { %v1800_v32 = vmul.f32 0.5, %v2187_v26  ;;  %v2189_v48 = vadd.f32 %v1738_v30, %v2986_v18  ;;  %v2221_v3 = vadd.f32 %v1781_v27, %v2995_v7  ;;  %v1810_v6 = vmul.f32 0.5, %v2219_v2 }
 0x72e   :  { %2516 = vtanh.f32 %v1792_v25  ;;  %v1793_v62 = vmul.f32 0.5, %v2188_v24 }
 0x72f   :  { %2518 = vtanh.f32 %v1800_v32  ;;  %v1801_v63 = vmul.f32 0.5, %v2189_v48  ;;  %v1811_v10 = vmul.f32 0.5, %v2221_v3 }
 0x730   :  { %2520 = vtanh.f32 %v1793_v62 }
 0x731   :  { %2522 = vtanh.f32 %v2218_v38 }
 0x732   :  { %2524 = vtanh.f32 %v1801_v63 }
 0x733   :  { %2526 = vtanh.f32 %v2220_v0 }
 0x734   :  { %2528 = vtanh.f32 %v1810_v6 }
 0x735   :  { %2530 = vtanh.f32 %v1811_v10 }
 0x738   :  { %v2517_v4 = vpop.eup %2516 }
 0x739   :  { %v2519_v5 = vpop.eup %2518  ;;  %v1796_v43 = vmul.f32 0.5, %v2517_v4 }
 0x73a   :  { %v1804_v9 = vmul.f32 0.5, %v2519_v5  ;;  %v2521_v31 = vpop.eup %2520 }
 0x73b   :  { %v1798_v12 = vadd.f32 0.5, %v1796_v43  ;;  %v2523_v13 = vpop.eup %2522  ;;  %v1797_v15 = vmul.f32 0.5, %v2521_v31 }
 0x73c   :  { %v1806_v35 = vadd.f32 0.5, %v1804_v9  ;;  %v2525_v17 = vpop.eup %2524 }
 0x73d   :  { %v1820_v59 = vmul.f32 %v2523_v13, %v1798_v12  ;;  %v1799_v19 = vadd.f32 0.5, %v1797_v15  ;;  %v1805_v20 = vmul.f32 0.5, %v2525_v17  ;;  %v2527_v21 = vpop.eup %2526 }
 0x73e   :  { %v1818_v60 = vmul.f32 %v1806_v35, %v3424_v42  ;;  %v2529_v41 = vpop.eup %2528 }
 0x73f   :  { %v1807_v37 = vadd.f32 0.5, %v1805_v20  ;;  %v1821_v39 = vmul.f32 %v2527_v21, %v1799_v19  ;;  %v2531_v61 = vpop.eup %2530  ;;  %v1814_v45 = vmul.f32 0.5, %v2529_v41 }
 0x740   :  { %v1822_v14 = vadd.f32 %v1820_v59, %v1818_v60  ;;  %v1815_v46 = vmul.f32 0.5, %v2531_v61 }
 0x741   :  { %v1819_v40 = vmul.f32 %v1807_v37, %v3428_v50  ;;  %v1816_v42 = vadd.f32 0.5, %v1814_v45 }
 0x742   :  { %2532 = vtanh.f32 %v1822_v14  ;;  %v1817_v47 = vadd.f32 0.5, %v1815_v46 }
 0x743   :  { %v3476_v36 = vadd.f32 %v1821_v39, %v1819_v40 }
 0x745   :  { %2534 = vtanh.f32 %v3476_v36 }
 0x74c   :  { %v2533_v49 = vpop.eup %2532 }
 0x74d   :  { %v1826_v51 = vmul.f32 %v2533_v49, %v1816_v42 }
 0x74f   :  { %v2535_v8 = vpop.eup %2534 }
 0x750   :  { %v1827_v44 = vmul.f32 %v2535_v8, %v1817_v47 }
 0x752   :  { %v1828_v53 = vpack.c.bf16 %v1827_v44, %v1826_v51 }
 0x754   :  { %2160 = vst [vmem:[%s3498_s4 + $0x30] sm:$0xff] %v1828_v53   ;;  %1881 = vmatmul.mubr.bf16.vlgmr.msra.gmra.mrb[28].mxu0 %v1828_v53  ;;  %1924 = vmatmul.mubr.bf16.vlgmr.msra.gmra.mrb[28].mxu1 %v1828_v53 }
 0x827   :  { %v1882_v50 = vpop.f32.mrb[28].mxu0  ;;  %v1925_v52 = vpop.f32.mrb[28].mxu1 }
 0x828   :  { %v2190_v54 = vadd.f32 %v1882_v50, %v2984_v16  ;;  %v1884_v55 = vpop.f32.mrb[29].mxu0  ;;  %v1927_v56 = vpop.f32.mrb[29].mxu1  ;;  %v2222_v28 = vadd.f32 %v1925_v52, %v2989_v22 }
 0x829   :  { %v2191_v57 = vadd.f32 %v1884_v55, %v2986_v18  ;;  %v1886_v58 = vpop.f32.mrb[30].mxu0  ;;  %v1929_v1 = vpop.f32.mrb[30].mxu1  ;;  %v2223_v27 = vadd.f32 %v1927_v56, %v2995_v7 }
 0x82a   :  { %v1942_v11 = vmul.f32 0.5, %v2190_v54  ;;  %v2192_v33 = vadd.f32 %v1886_v58, %v2984_v16  ;;  %v1888_v34 = vpop.f32.mrb[31].mxu0  ;;  %v1931_v23 = vpop.f32.mrb[31].mxu1  ;;  %v2224_v30 = vadd.f32 %v1929_v1, %v2989_v22 }
 0x82b   :  { %v1950_v26 = vmul.f32 0.5, %v2191_v57  ;;  %v2193_v29 = vadd.f32 %v1888_v34, %v2986_v18  ;;  %v1960_v16 = vmul.f32 0.5, %v2223_v27  ;;  %v2225_v32 = vadd.f32 %v1931_v23, %v2995_v7 }
 0x82c   :  { %2536 = vtanh.f32 %v1942_v11  ;;  %v1943_v25 = vmul.f32 0.5, %v2192_v33 }
 0x82d   :  { %2538 = vtanh.f32 %v1950_v26  ;;  %v1951_v24 = vmul.f32 0.5, %v2193_v29  ;;  %v1961_v63 = vmul.f32 0.5, %v2225_v32 }
 0x82e   :  { %2540 = vtanh.f32 %v1943_v25 }
 0x82f   :  { %2542 = vtanh.f32 %v2222_v28 }
 0x830   :  { %2544 = vtanh.f32 %v1951_v24 }
 0x831   :  { %2546 = vtanh.f32 %v2224_v30 }
 0x832   :  { %2548 = vtanh.f32 %v1960_v16 }
 0x833   :  { %2550 = vtanh.f32 %v1961_v63 }
 0x836   :  { %v2537_v48 = vpop.eup %2536 }
 0x837   :  { %v2539_v38 = vpop.eup %2538  ;;  %v1946_v18 = vmul.f32 0.5, %v2537_v48 }
 0x838   :  { %v1954_v62 = vmul.f32 0.5, %v2539_v38  ;;  %v2541_v0 = vpop.eup %2540 }
 0x839   :  { %v1948_v2 = vadd.f32 0.5, %v1946_v18  ;;  %v2543_v3 = vpop.eup %2542  ;;  %v1947_v5 = vmul.f32 0.5, %v2541_v0 }
 0x83a   :  { %v1956_v4 = vadd.f32 0.5, %v1954_v62  ;;  %v2545_v22 = vpop.eup %2544 }
 0x83b   :  { %v1970_v43 = vmul.f32 %v2543_v3, %v1948_v2  ;;  %v1949_v9 = vadd.f32 0.5, %v1947_v5  ;;  %v1955_v10 = vmul.f32 0.5, %v2545_v22  ;;  %v2547_v31 = vpop.eup %2546 }
 0x83c   :  { %v1968_v6 = vmul.f32 %v1956_v4, %v1822_v14  ;;  %v2549_v15 = vpop.eup %2548 }
 0x83d   :  { %v1957_v7 = vadd.f32 0.5, %v1955_v10  ;;  %v1971_v13 = vmul.f32 %v2547_v31, %v1949_v9  ;;  %v1964_v59 = vmul.f32 0.5, %v2549_v15  ;;  %v2551_v60 = vpop.eup %2550 }
 0x83e   :  { %v1972_v12 = vadd.f32 %v1970_v43, %v1968_v6  ;;  %v1965_v20 = vmul.f32 0.5, %v2551_v60 }
 0x83f   :  { %v1969_v35 = vmul.f32 %v1957_v7, %v3476_v36  ;;  %v1966_v19 = vadd.f32 0.5, %v1964_v59 }
 0x840   :  { %2552 = vtanh.f32 %v1972_v12  ;;  %v1967_v14 = vadd.f32 0.5, %v1965_v20 }
 0x841   :  { %v1973_v17 = vadd.f32 %v1971_v13, %v1969_v35 }
 0x843   :  { %2554 = vtanh.f32 %v1973_v17 }
 0x84a   :  { %v2553_v21 = vpop.eup %2552 }
 0x84b   :  { %v1976_v37 = vmul.f32 %v2553_v21, %v1966_v19 }
 0x84d   :  { %v2555_v39 = vpop.eup %2554 }
 0x84e   :  { %v1977_v40 = vmul.f32 %v2555_v39, %v1967_v14 }
 0x850   :  { %v2153_v41 = vpack.c.bf16 %v1977_v40, %v1976_v37 }
 0x852   :  { %2161 = vst [vmem:[%s3498_s4 + $0x38] sm:$0xff] %v2153_v41  }

</bundles_post_ra>
